<compile_context>
chip_gen: v7x
topology: tpu7x:2x2x1
jax: 0.10.0
libtpu: 0.0.40
codegen_flags: <defaults>
</compile_context>

<pallas_src>
import functools
import math

import jax
import jax.numpy as jnp
import numpy as np
from jax.experimental import pallas as pl
from jax.experimental.pallas import tpu as pltpu


def _layernorm(x, gamma, beta, eps=1e-5):
    mu = jnp.mean(x, axis=-1, keepdims=True)
    var = jnp.mean((x - mu) ** 2, axis=-1, keepdims=True)
    return (x - mu) * jax.lax.rsqrt(var + eps) * gamma + beta


def _gelu_exact(x):
    # nn.GELU() default = exact erf formulation (PyTorch parity).
    return 0.5 * x * (1.0 + jax.lax.erf(x * (1.0 / math.sqrt(2.0))))


def _gelu_tanh(x):
    # tanh approximation -> transcendental goes to the EUP slot (free under MXU).
    c = math.sqrt(2.0 / math.pi)
    return 0.5 * x * (1.0 + jnp.tanh(c * (x + 0.044715 * x * x * x)))


def transformer_encoder_kernel(
    x_ref,       # (Bb, N, E) f32
    wqkv_ref,    # (E, 3E) bf16   columns = [Q heads | K heads | V heads]; Q pre-scaled
    bqkv_ref,    # (1, 3E) f32    (Q part pre-scaled)
    wp_ref,      # (E, E)  bf16   output projection
    w1_ref,      # (E, 4E) bf16   MLP fc
    bb1_ref,     # (1, 4E) f32
    w2_ref,      # (4E, E) bf16   MLP fc2
    vecs_ref,    # (6, E)  f32    rows = [g1, b1, g2, b2, bp, bb2]
    o_ref,       # (Bb, N, E)
    heads_ref,   # (Bb, N, E) bf16 VMEM scratch: lane-contiguous head outputs
    *, n_heads, d_h, n_tokens, batch_block, gelu_approx,
):
    f32 = jnp.float32
    bf16 = jnp.bfloat16
    N = n_tokens
    Bb = batch_block
    E = n_heads * d_h
    M = Bb * N

    # Fold the batch block into the sublane axis -> one lane-dense (M, E) slab.
    # Free when Bb == 1 (default); one relayout copy otherwise if N % 8 != 0.
    x = x_ref[...].reshape(M, E)

    g1 = vecs_ref[0:1, :]
    b1 = vecs_ref[1:2, :]
    g2 = vecs_ref[2:3, :]
    b2 = vecs_ref[3:4, :]
    bp = vecs_ref[4:5, :]
    bb2 = vecs_ref[5:6, :]

    # --- LayerNorm 1 (f32 elementwise) ---
    xn = _layernorm(x, g1, b1)

    # --- Fused QKV projection: one (M, E) @ (E, 3E) bf16 matmul, f32 accum ---
    qkv = jnp.dot(xn.astype(bf16), wqkv_ref[...], preferred_element_type=f32)
    qkv = (qkv + bqkv_ref[...]).astype(bf16)       # single full-slab bf16 cast
    qkv3 = qkv.reshape(Bb, N, 3 * E)

    # --- Multi-head self-attention (batched over the batch-block axis) ---
    # TODO(synk): flash-style KV tiling once N is large (full (N,N) scores here).
    for h in range(n_heads):                       # static unroll over heads
        q = qkv3[:, :, h * d_h:(h + 1) * d_h]          # 1/sqrt(d_h) pre-folded
        k = qkv3[:, :, E + h * d_h:E + (h + 1) * d_h]
        v = qkv3[:, :, 2 * E + h * d_h:2 * E + (h + 1) * d_h]
        s = jnp.einsum("bnd,bmd->bnm", q, k, preferred_element_type=f32)
        s = s - jnp.max(s, axis=-1, keepdims=True)
        p = jnp.exp(s)
        p = p * pl.reciprocal(jnp.sum(p, axis=-1, keepdims=True), approx=True)
        o_h = jnp.einsum("bnm,bmd->bnd", p.astype(bf16), v,
                         preferred_element_type=f32)   # (Bb, N, d_h)
        # Head "concat": write into this head's lane slot of the scratch slab.
        heads_ref[:, :, h * d_h:(h + 1) * d_h] = o_h.astype(bf16)

    # ONE full-depth output projection: (M, E) @ (E, E), K = E.
    heads = heads_ref[...].reshape(M, E)
    attn = jnp.dot(heads, wp_ref[...], preferred_element_type=f32) + bp

    x1 = x + attn                      # residual 1

    # --- LayerNorm 2 ---
    x2 = _layernorm(x1, g2, b2)

    # --- MLP (bf16 matmuls, f32 accumulation / elementwise) ---
    h1 = jnp.dot(x2.astype(bf16), w1_ref[...], preferred_element_type=f32) + bb1_ref[...]
    h1 = _gelu_tanh(h1) if gelu_approx else _gelu_exact(h1)
    h2 = jnp.dot(h1.astype(bf16), w2_ref[...], preferred_element_type=f32) + bb2

    o_ref[...] = (h2 + x1).reshape(Bb, N, E).astype(o_ref.dtype)   # residual 2


def _const_spec(shape, single_buffer):
    nd = len(shape)
    index_map = lambda i, _nd=nd: (0,) * _nd
    if single_buffer:
        # Constant-index weights never change across the grid; a single VMEM
        # buffer (instead of the default double buffer) halves weight VMEM.
        return pl.BlockSpec(shape, index_map, pipeline_mode=pl.Buffered(1))
    return pl.BlockSpec(shape, index_map)


def _vmem_capacity_bytes():
    """Per-core VMEM capacity; conservative 64 MiB (v7x) if query unavailable."""
    try:
        info = pltpu.get_tpu_info()
        cap = getattr(info, "vmem_capacity_bytes", None)
        if cap:
            return int(cap)
    except Exception:
        pass
    return 64 * 1024 * 1024


def _estimate_vmem_limit_bytes(batch_block, N, E, x_itemsize, single_buffer_weights):
    """Derive the scoped-VMEM limit from the actual buffers this kernel holds."""
    E3, E4 = 3 * E, 4 * E
    M = batch_block * N
    wbuf = 1 if single_buffer_weights else 2
    # bf16 weights + f32 bias/vector packs (single- or double-buffered).
    weight_bytes = wbuf * 2 * (E * E3 + E * E + E * E4 + E4 * E)
    weight_bytes += wbuf * 4 * (E3 + E4 + 6 * E)
    # x and out blocks, double-buffered by the pipeline.
    io_bytes = 2 * 2 * (batch_block * N * E * x_itemsize)
    # Head-output scratch (bf16).
    scratch_bytes = 2 * M * E
    # f32 intermediates: xn, qkv, attn/x1/x2, h1, one head's scores+probs,
    # plus bf16 copies of qkv / h1 for the MXU.
    inter_bytes = 4 * (M * E + M * E3 + 3 * M * E + M * E4
                       + 2 * batch_block * N * N)
    inter_bytes += 2 * (M * E3 + M * E4)
    total = weight_bytes + io_bytes + scratch_bytes + inter_bytes
    total = int(total * 1.2) + (4 << 20)          # headroom for compiler temps
    cap = _vmem_capacity_bytes()
    return max(16 << 20, min(total, cap - (8 << 20)))


def transformer_encoder(x, fused, n_heads, *, batch_block=1,
                        single_buffer_weights=True, gelu_approx=False,
                        vmem_limit_bytes=None):
    B, N, E = x.shape
    assert B % batch_block == 0
    assert E % n_heads == 0
    d_h = E // n_heads
    E3, E4 = 3 * E, 4 * E
    grid_len = B // batch_block
    # NOTE: keep grid_len >= 2 on v7x so dimension_semantics=("parallel",)
    # actually splits work across the two TensorCores (never batch_block=B).

    if vmem_limit_bytes is None:
        vmem_limit_bytes = _estimate_vmem_limit_bytes(
            batch_block, N, E, jnp.dtype(x.dtype).itemsize, single_buffer_weights)

    in_specs = [
        pl.BlockSpec((batch_block, N, E), lambda i: (i, 0, 0)),     # x
        _const_spec((E, E3), single_buffer_weights),                # w_qkv
        _const_spec((1, E3), single_buffer_weights),                # b_qkv
        _const_spec((E, E), single_buffer_weights),                 # wp
        _const_spec((E, E4), single_buffer_weights),                # w1
        _const_spec((1, E4), single_buffer_weights),                # bb1
        _const_spec((E4, E), single_buffer_weights),                # w2
        _const_spec((6, E), single_buffer_weights),                 # vecs
    ]
    out_specs = pl.BlockSpec((batch_block, N, E), lambda i: (i, 0, 0))

    kernel = functools.partial(
        transformer_encoder_kernel,
        n_heads=n_heads, d_h=d_h, n_tokens=N, batch_block=batch_block,
        gelu_approx=gelu_approx,
    )

    return pl.pallas_call(
        kernel,
        out_shape=jax.ShapeDtypeStruct((B, N, E), x.dtype),
        grid=(grid_len,),
        in_specs=in_specs,
        out_specs=out_specs,
        scratch_shapes=[pltpu.VMEM((batch_block, N, E), jnp.bfloat16)],
        compiler_params=pltpu.CompilerParams(
            dimension_semantics=("parallel",),       # megacore / dual-TC on v7x
            vmem_limit_bytes=int(vmem_limit_bytes),
        ),
    )(
        x,
        fused["w_qkv"], fused["b_qkv"], fused["wp"],
        fused["w1"], fused["bb1"], fused["w2"], fused["vecs"],
    )


def fuse_params(p, n_heads):
    """Pack torch-layout per-head params into fused bf16/f32 kernel params."""
    E = p["wp"].shape[0]
    d_h = E // n_heads
    scale = 1.0 / (d_h ** 0.5)

    def merge_w(w):   # (H, E, d_h) -> (E, H*d_h), columns grouped per head
        return jnp.transpose(w, (1, 0, 2)).reshape(E, n_heads * d_h)

    def merge_b(b):   # (H, 1, d_h) -> (1, H*d_h)
        return b.reshape(1, n_heads * d_h)

    w_qkv = jnp.concatenate(
        [merge_w(p["wq"]) * scale, merge_w(p["wk"]), merge_w(p["wv"])], axis=1
    ).astype(jnp.bfloat16)
    b_qkv = jnp.concatenate(
        [merge_b(p["bq"]) * scale, merge_b(p["bk"]), merge_b(p["bv"])], axis=1
    ).astype(jnp.float32)
    vecs = jnp.concatenate(
        [p["g1"], p["b1"], p["g2"], p["b2"], p["bp"], p["bb2"]], axis=0
    ).astype(jnp.float32)

    return {
        "w_qkv": w_qkv,
        "b_qkv": b_qkv,
        "wp": p["wp"].astype(jnp.bfloat16),
        "w1": p["w1"].astype(jnp.bfloat16),
        "bb1": p["bb1"].astype(jnp.float32),
        "w2": p["w2"].astype(jnp.bfloat16),
        "vecs": vecs,
    }


def reference_forward(x, p, n_heads):
    """Pure-JAX f32 reference with identical semantics (dropout == identity)."""
    d_h = x.shape[-1] // n_heads

    def ln(v, g, b):
        mu = v.mean(-1, keepdims=True)
        var = ((v - mu) ** 2).mean(-1, keepdims=True)
        return (v - mu) / jnp.sqrt(var + 1e-5) * g + b

    xn = ln(x, p["g1"], p["b1"])
    heads = []
    for h in range(n_heads):
        q = xn @ p["wq"][h] + p["bq"][h]
        k = xn @ p["wk"][h] + p["bk"][h]
        v = xn @ p["wv"][h] + p["bv"][h]
        wei = jnp.einsum("bnd,bmd->bnm", q, k) / (d_h ** 0.5)
        wei = jax.nn.softmax(wei, axis=-1)
        heads.append(jnp.einsum("bnm,bmd->bnd", wei, v))
    attn = jnp.concatenate(heads, axis=-1) @ p["wp"] + p["bp"]
    x1 = x + attn
    x2 = ln(x1, p["g2"], p["b2"])
    h1 = jax.nn.gelu(x2 @ p["w1"] + p["bb1"], approximate=False)
    return h1 @ p["w2"] + p["bb2"] + x1


def make_params(key, E, n_heads):
    d_h = E // n_heads
    E4 = 4 * E
    ks = jax.random.split(key, 16)
    s = 0.05
    f32 = jnp.float32
    return {
        "g1": 1.0 + s * jax.random.normal(ks[0], (1, E), f32),
        "b1": s * jax.random.normal(ks[1], (1, E), f32),
        "wq": s * jax.random.normal(ks[2], (n_heads, E, d_h), f32),
        "wk": s * jax.random.normal(ks[3], (n_heads, E, d_h), f32),
        "wv": s * jax.random.normal(ks[4], (n_heads, E, d_h), f32),
        "bq": s * jax.random.normal(ks[5], (n_heads, 1, d_h), f32),
        "bk": s * jax.random.normal(ks[6], (n_heads, 1, d_h), f32),
        "bv": s * jax.random.normal(ks[7], (n_heads, 1, d_h), f32),
        "wp": s * jax.random.normal(ks[8], (E, E), f32),
        "bp": s * jax.random.normal(ks[9], (1, E), f32),
        "g2": 1.0 + s * jax.random.normal(ks[10], (1, E), f32),
        "b2": s * jax.random.normal(ks[11], (1, E), f32),
        "w1": s * jax.random.normal(ks[12], (E, E4), f32),
        "bb1": s * jax.random.normal(ks[13], (1, E4), f32),
        "w2": s * jax.random.normal(ks[14], (E4, E), f32),
        "bb2": s * jax.random.normal(ks[15], (1, E), f32),
    }


if __name__ == "__main__":
    B, N, E, H = 2, 8, 32, 4   # batch, seq, embeddings, heads

    key = jax.random.PRNGKey(0)
    k_x, k_p = jax.random.split(key)
    x = jax.random.normal(k_x, (B, N, E), jnp.float32)
    params = make_params(k_p, E, H)
    fused = fuse_params(params, H)

    try:
        out = transformer_encoder(x, fused, H, batch_block=1)
        out = jax.block_until_ready(out)
    except Exception:
        # pl.Buffered(1) single-buffering of constant weights is a VMEM-only
        # optimization; if this JAX/Mosaic build rejects it, fall back to the
        # default double buffering (the wrapper recomputes vmem_limit_bytes
        # for the doubled weight footprint).
        out = transformer_encoder(x, fused, H, batch_block=1,
                                  single_buffer_weights=False)
        out = jax.block_until_ready(out)

    ref = jax.block_until_ready(reference_forward(x, params, H))
    assert out.shape == (B, N, E)
    # bf16 MXU inputs + approximate-reciprocal softmax vs. pure-f32 reference.
    np.testing.assert_allclose(np.asarray(out), np.asarray(ref), rtol=2e-2, atol=2e-2)

    print("KERNEL_OK")
</pallas_src>

<mosaic_0001>
module attributes {stable_mosaic.version = 11 : i64} {
  func.func @transformer_encoder_kernel(%arg0: i32, %arg1: memref<1x8x32xf32, #tpu.memory_space<vmem>>, %arg2: memref<32x96xbf16, #tpu.memory_space<vmem>>, %arg3: memref<1x96xf32, #tpu.memory_space<vmem>>, %arg4: memref<32x32xbf16, #tpu.memory_space<vmem>>, %arg5: memref<32x128xbf16, #tpu.memory_space<vmem>>, %arg6: memref<1x128xf32, #tpu.memory_space<vmem>>, %arg7: memref<128x32xbf16, #tpu.memory_space<vmem>>, %arg8: memref<6x32xf32, #tpu.memory_space<vmem>>, %arg9: memref<1x8x32xf32, #tpu.memory_space<vmem>>, %arg10: memref<1x8x32xbf16, #tpu.memory_space<vmem>>) attributes {dimension_semantics = [#tpu.dimension_semantics<parallel>], iteration_bounds = array<i64: 2>, scalar_prefetch = 0 : i64, scratch_operands = 1 : i64, tpu.core_type = #tpu.core_type<tc>, window_params = [{transform_indices = @transform_0, window_bounds = array<i64: 1, 8, 32>}, {pipeline_mode = #tpu.pipeline_mode<synchronous>, transform_indices = @transform_1, window_bounds = array<i64: 32, 96>}, {pipeline_mode = #tpu.pipeline_mode<synchronous>, transform_indices = @transform_2, window_bounds = array<i64: 1, 96>}, {pipeline_mode = #tpu.pipeline_mode<synchronous>, transform_indices = @transform_3, window_bounds = array<i64: 32, 32>}, {pipeline_mode = #tpu.pipeline_mode<synchronous>, transform_indices = @transform_4, window_bounds = array<i64: 32, 128>}, {pipeline_mode = #tpu.pipeline_mode<synchronous>, transform_indices = @transform_5, window_bounds = array<i64: 1, 128>}, {pipeline_mode = #tpu.pipeline_mode<synchronous>, transform_indices = @transform_6, window_bounds = array<i64: 128, 32>}, {pipeline_mode = #tpu.pipeline_mode<synchronous>, transform_indices = @transform_7, window_bounds = array<i64: 6, 32>}, {transform_indices = @transform_8, window_bounds = array<i64: 1, 8, 32>}]} {
    %c0 = arith.constant 0 : index
    %c0_0 = arith.constant 0 : index
    %c0_1 = arith.constant 0 : index
    %0 = vector.load %arg1[%c0, %c0_0, %c0_1] : memref<1x8x32xf32, #tpu.memory_space<vmem>>, vector<1x8x32xf32>
    %1 = vector.shape_cast %0 : vector<1x8x32xf32> to vector<8x32xf32>
    %c0_2 = arith.constant 0 : index
    %c0_3 = arith.constant 0 : index
    %2 = vector.load %arg8[%c0_2, %c0_3] : memref<6x32xf32, #tpu.memory_space<vmem>>, vector<1x32xf32>
    %c1 = arith.constant 1 : index
    %c0_4 = arith.constant 0 : index
    %3 = vector.load %arg8[%c1, %c0_4] : memref<6x32xf32, #tpu.memory_space<vmem>>, vector<1x32xf32>
    %c2 = arith.constant 2 : index
    %c0_5 = arith.constant 0 : index
    %4 = vector.load %arg8[%c2, %c0_5] : memref<6x32xf32, #tpu.memory_space<vmem>>, vector<1x32xf32>
    %c3 = arith.constant 3 : index
    %c0_6 = arith.constant 0 : index
    %5 = vector.load %arg8[%c3, %c0_6] : memref<6x32xf32, #tpu.memory_space<vmem>>, vector<1x32xf32>
    %c4 = arith.constant 4 : index
    %c0_7 = arith.constant 0 : index
    %6 = vector.load %arg8[%c4, %c0_7] : memref<6x32xf32, #tpu.memory_space<vmem>>, vector<1x32xf32>
    %c5 = arith.constant 5 : index
    %c0_8 = arith.constant 0 : index
    %7 = vector.load %arg8[%c5, %c0_8] : memref<6x32xf32, #tpu.memory_space<vmem>>, vector<1x32xf32>
    %cst = arith.constant dense<0.000000e+00> : vector<8xf32>
    %8 = vector.multi_reduction <add>, %1, %cst [1] : vector<8x32xf32> to vector<8xf32>
    %9 = vector.shape_cast %8 : vector<8xf32> to vector<8x1xf32>
    %cst_9 = arith.constant 3.200000e+01 : f32
    %10 = vector.broadcast %cst_9 : f32 to vector<8x1xf32>
    %11 = arith.divf %9, %10 : vector<8x1xf32>
    %12 = vector.broadcast %11 : vector<8x1xf32> to vector<8x32xf32>
    %13 = arith.subf %1, %12 : vector<8x32xf32>
    %14 = arith.mulf %13, %13 : vector<8x32xf32>
    %cst_10 = arith.constant dense<0.000000e+00> : vector<8xf32>
    %15 = vector.multi_reduction <add>, %14, %cst_10 [1] : vector<8x32xf32> to vector<8xf32>
    %16 = vector.shape_cast %15 : vector<8xf32> to vector<8x1xf32>
    %cst_11 = arith.constant 3.200000e+01 : f32
    %17 = vector.broadcast %cst_11 : f32 to vector<8x1xf32>
    %18 = arith.divf %16, %17 : vector<8x1xf32>
    %19 = vector.broadcast %11 : vector<8x1xf32> to vector<8x32xf32>
    %20 = arith.subf %1, %19 : vector<8x32xf32>
    %cst_12 = arith.constant 9.99999974E-6 : f32
    %21 = vector.broadcast %cst_12 : f32 to vector<8x1xf32>
    %22 = arith.addf %18, %21 : vector<8x1xf32>
    %23 = math.rsqrt %22 : vector<8x1xf32>
    %24 = vector.broadcast %23 : vector<8x1xf32> to vector<8x32xf32>
    %25 = arith.mulf %20, %24 : vector<8x32xf32>
    %26 = vector.broadcast %2 : vector<1x32xf32> to vector<8x32xf32>
    %27 = arith.mulf %25, %26 : vector<8x32xf32>
    %28 = vector.broadcast %3 : vector<1x32xf32> to vector<8x32xf32>
    %29 = arith.addf %27, %28 : vector<8x32xf32>
    %30 = arith.truncf %29 : vector<8x32xf32> to vector<8x32xbf16>
    %c0_13 = arith.constant 0 : index
    %c0_14 = arith.constant 0 : index
    %31 = vector.load %arg2[%c0_13, %c0_14] : memref<32x96xbf16, #tpu.memory_space<vmem>>, vector<32x96xbf16>
    %cst_15 = arith.constant dense<0.000000e+00> : vector<8x96xf32>
    %32 = tpu.matmul %30, %31, %cst_15 {dimension_numbers = #tpu.dot_dimension_numbers<[1], [0], [0], [1], [0, 0, 1, 1], [], []>} : vector<8x32xbf16>, vector<32x96xbf16>, vector<8x96xf32> -> vector<8x96xf32>
    %c0_16 = arith.constant 0 : index
    %c0_17 = arith.constant 0 : index
    %33 = vector.load %arg3[%c0_16, %c0_17] : memref<1x96xf32, #tpu.memory_space<vmem>>, vector<1x96xf32>
    %34 = vector.broadcast %33 : vector<1x96xf32> to vector<8x96xf32>
    %35 = arith.addf %32, %34 : vector<8x96xf32>
    %36 = arith.truncf %35 : vector<8x96xf32> to vector<8x96xbf16>
    %37 = vector.shape_cast %36 : vector<8x96xbf16> to vector<1x8x96xbf16>
    %38 = vector.extract_strided_slice %37 {offsets = [0, 0, 0], sizes = [1, 8, 8], strides = [1, 1, 1]} : vector<1x8x96xbf16> to vector<1x8x8xbf16>
    %39 = vector.extract_strided_slice %37 {offsets = [0, 0, 32], sizes = [1, 8, 8], strides = [1, 1, 1]} : vector<1x8x96xbf16> to vector<1x8x8xbf16>
    %40 = vector.extract_strided_slice %37 {offsets = [0, 0, 64], sizes = [1, 8, 8], strides = [1, 1, 1]} : vector<1x8x96xbf16> to vector<1x8x8xbf16>
    "tpu.trace_start"() <{level = 10 : i32, message = "bnd,bmd->bnm"}> : () -> ()
    %cst_18 = arith.constant dense<0.000000e+00> : vector<1x8x8xf32>
    %41 = tpu.matmul %38, %39, %cst_18 {dimension_numbers = #tpu.dot_dimension_numbers<[2], [2], [1], [1], [0, 0, 0, 1, 1, 1], [0], [0]>} : vector<1x8x8xbf16>, vector<1x8x8xbf16>, vector<1x8x8xf32> -> vector<1x8x8xf32>
    "tpu.trace_stop"() : () -> ()
    %cst_19 = arith.constant dense<0xFF800000> : vector<1x8xf32>
    %42 = vector.multi_reduction <maximumf>, %41, %cst_19 [2] : vector<1x8x8xf32> to vector<1x8xf32>
    %43 = vector.shape_cast %42 : vector<1x8xf32> to vector<1x8x1xf32>
    %44 = vector.broadcast %43 : vector<1x8x1xf32> to vector<1x8x8xf32>
    %45 = arith.subf %41, %44 : vector<1x8x8xf32>
    %46 = math.exp %45 : vector<1x8x8xf32>
    %cst_20 = arith.constant dense<0.000000e+00> : vector<1x8xf32>
    %47 = vector.multi_reduction <add>, %46, %cst_20 [2] : vector<1x8x8xf32> to vector<1x8xf32>
    %48 = vector.shape_cast %47 : vector<1x8xf32> to vector<1x8x1xf32>
    %49 = tpu.reciprocal %48 {approx = true} : vector<1x8x1xf32> -> vector<1x8x1xf32>
    %50 = vector.broadcast %49 : vector<1x8x1xf32> to vector<1x8x8xf32>
    %51 = arith.mulf %46, %50 : vector<1x8x8xf32>
    %52 = arith.truncf %51 : vector<1x8x8xf32> to vector<1x8x8xbf16>
    "tpu.trace_start"() <{level = 10 : i32, message = "bnm,bmd->bnd"}> : () -> ()
    %cst_21 = arith.constant dense<0.000000e+00> : vector<1x8x8xf32>
    %53 = tpu.matmul %52, %40, %cst_21 {dimension_numbers = #tpu.dot_dimension_numbers<[2], [1], [1], [2], [0, 0, 0, 1, 1, 2], [0], [0]>} : vector<1x8x8xbf16>, vector<1x8x8xbf16>, vector<1x8x8xf32> -> vector<1x8x8xf32>
    "tpu.trace_stop"() : () -> ()
    %54 = arith.truncf %53 : vector<1x8x8xf32> to vector<1x8x8xbf16>
    %c0_22 = arith.constant 0 : index
    %c0_23 = arith.constant 0 : index
    %c0_24 = arith.constant 0 : index
    %55 = vector.load %arg10[%c0_22, %c0_23, %c0_24] : memref<1x8x32xbf16, #tpu.memory_space<vmem>>, vector<1x8x8xbf16>
    tpu.vector_store %arg10[%c0_22, %c0_23, %c0_24], %54 {strides = array<i32>} : memref<1x8x32xbf16, #tpu.memory_space<vmem>>, vector<1x8x8xbf16>,
    %56 = vector.extract_strided_slice %37 {offsets = [0, 0, 8], sizes = [1, 8, 8], strides = [1, 1, 1]} : vector<1x8x96xbf16> to vector<1x8x8xbf16>
    %57 = vector.extract_strided_slice %37 {offsets = [0, 0, 40], sizes = [1, 8, 8], strides = [1, 1, 1]} : vector<1x8x96xbf16> to vector<1x8x8xbf16>
    %58 = vector.extract_strided_slice %37 {offsets = [0, 0, 72], sizes = [1, 8, 8], strides = [1, 1, 1]} : vector<1x8x96xbf16> to vector<1x8x8xbf16>
    "tpu.trace_start"() <{level = 10 : i32, message = "bnd,bmd->bnm"}> : () -> ()
    %cst_25 = arith.constant dense<0.000000e+00> : vector<1x8x8xf32>
    %59 = tpu.matmul %56, %57, %cst_25 {dimension_numbers = #tpu.dot_dimension_numbers<[2], [2], [1], [1], [0, 0, 0, 1, 1, 1], [0], [0]>} : vector<1x8x8xbf16>, vector<1x8x8xbf16>, vector<1x8x8xf32> -> vector<1x8x8xf32>
    "tpu.trace_stop"() : () -> ()
    %cst_26 = arith.constant dense<0xFF800000> : vector<1x8xf32>
    %60 = vector.multi_reduction <maximumf>, %59, %cst_26 [2] : vector<1x8x8xf32> to vector<1x8xf32>
    %61 = vector.shape_cast %60 : vector<1x8xf32> to vector<1x8x1xf32>
    %62 = vector.broadcast %61 : vector<1x8x1xf32> to vector<1x8x8xf32>
    %63 = arith.subf %59, %62 : vector<1x8x8xf32>
    %64 = math.exp %63 : vector<1x8x8xf32>
    %cst_27 = arith.constant dense<0.000000e+00> : vector<1x8xf32>
    %65 = vector.multi_reduction <add>, %64, %cst_27 [2] : vector<1x8x8xf32> to vector<1x8xf32>
    %66 = vector.shape_cast %65 : vector<1x8xf32> to vector<1x8x1xf32>
    %67 = tpu.reciprocal %66 {approx = true} : vector<1x8x1xf32> -> vector<1x8x1xf32>
    %68 = vector.broadcast %67 : vector<1x8x1xf32> to vector<1x8x8xf32>
    %69 = arith.mulf %64, %68 : vector<1x8x8xf32>
    %70 = arith.truncf %69 : vector<1x8x8xf32> to vector<1x8x8xbf16>
    "tpu.trace_start"() <{level = 10 : i32, message = "bnm,bmd->bnd"}> : () -> ()
    %cst_28 = arith.constant dense<0.000000e+00> : vector<1x8x8xf32>
    %71 = tpu.matmul %70, %58, %cst_28 {dimension_numbers = #tpu.dot_dimension_numbers<[2], [1], [1], [2], [0, 0, 0, 1, 1, 2], [0], [0]>} : vector<1x8x8xbf16>, vector<1x8x8xbf16>, vector<1x8x8xf32> -> vector<1x8x8xf32>
    "tpu.trace_stop"() : () -> ()
    %72 = arith.truncf %71 : vector<1x8x8xf32> to vector<1x8x8xbf16>
    %c0_29 = arith.constant 0 : index
    %c0_30 = arith.constant 0 : index
    %c8 = arith.constant 8 : index
    %73 = vector.load %arg10[%c0_29, %c0_30, %c8] : memref<1x8x32xbf16, #tpu.memory_space<vmem>>, vector<1x8x8xbf16>
    tpu.vector_store %arg10[%c0_29, %c0_30, %c8], %72 {strides = array<i32>} : memref<1x8x32xbf16, #tpu.memory_space<vmem>>, vector<1x8x8xbf16>,
    %74 = vector.extract_strided_slice %37 {offsets = [0, 0, 16], sizes = [1, 8, 8], strides = [1, 1, 1]} : vector<1x8x96xbf16> to vector<1x8x8xbf16>
    %75 = vector.extract_strided_slice %37 {offsets = [0, 0, 48], sizes = [1, 8, 8], strides = [1, 1, 1]} : vector<1x8x96xbf16> to vector<1x8x8xbf16>
    %76 = vector.extract_strided_slice %37 {offsets = [0, 0, 80], sizes = [1, 8, 8], strides = [1, 1, 1]} : vector<1x8x96xbf16> to vector<1x8x8xbf16>
    "tpu.trace_start"() <{level = 10 : i32, message = "bnd,bmd->bnm"}> : () -> ()
    %cst_31 = arith.constant dense<0.000000e+00> : vector<1x8x8xf32>
    %77 = tpu.matmul %74, %75, %cst_31 {dimension_numbers = #tpu.dot_dimension_numbers<[2], [2], [1], [1], [0, 0, 0, 1, 1, 1], [0], [0]>} : vector<1x8x8xbf16>, vector<1x8x8xbf16>, vector<1x8x8xf32> -> vector<1x8x8xf32>
    "tpu.trace_stop"() : () -> ()
    %cst_32 = arith.constant dense<0xFF800000> : vector<1x8xf32>
    %78 = vector.multi_reduction <maximumf>, %77, %cst_32 [2] : vector<1x8x8xf32> to vector<1x8xf32>
    %79 = vector.shape_cast %78 : vector<1x8xf32> to vector<1x8x1xf32>
    %80 = vector.broadcast %79 : vector<1x8x1xf32> to vector<1x8x8xf32>
    %81 = arith.subf %77, %80 : vector<1x8x8xf32>
    %82 = math.exp %81 : vector<1x8x8xf32>
    %cst_33 = arith.constant dense<0.000000e+00> : vector<1x8xf32>
    %83 = vector.multi_reduction <add>, %82, %cst_33 [2] : vector<1x8x8xf32> to vector<1x8xf32>
    %84 = vector.shape_cast %83 : vector<1x8xf32> to vector<1x8x1xf32>
    %85 = tpu.reciprocal %84 {approx = true} : vector<1x8x1xf32> -> vector<1x8x1xf32>
    %86 = vector.broadcast %85 : vector<1x8x1xf32> to vector<1x8x8xf32>
    %87 = arith.mulf %82, %86 : vector<1x8x8xf32>
    %88 = arith.truncf %87 : vector<1x8x8xf32> to vector<1x8x8xbf16>
    "tpu.trace_start"() <{level = 10 : i32, message = "bnm,bmd->bnd"}> : () -> ()
    %cst_34 = arith.constant dense<0.000000e+00> : vector<1x8x8xf32>
    %89 = tpu.matmul %88, %76, %cst_34 {dimension_numbers = #tpu.dot_dimension_numbers<[2], [1], [1], [2], [0, 0, 0, 1, 1, 2], [0], [0]>} : vector<1x8x8xbf16>, vector<1x8x8xbf16>, vector<1x8x8xf32> -> vector<1x8x8xf32>
    "tpu.trace_stop"() : () -> ()
    %90 = arith.truncf %89 : vector<1x8x8xf32> to vector<1x8x8xbf16>
    %c0_35 = arith.constant 0 : index
    %c0_36 = arith.constant 0 : index
    %c16 = arith.constant 16 : index
    %91 = vector.load %arg10[%c0_35, %c0_36, %c16] : memref<1x8x32xbf16, #tpu.memory_space<vmem>>, vector<1x8x8xbf16>
    tpu.vector_store %arg10[%c0_35, %c0_36, %c16], %90 {strides = array<i32>} : memref<1x8x32xbf16, #tpu.memory_space<vmem>>, vector<1x8x8xbf16>,
    %92 = vector.extract_strided_slice %37 {offsets = [0, 0, 24], sizes = [1, 8, 8], strides = [1, 1, 1]} : vector<1x8x96xbf16> to vector<1x8x8xbf16>
    %93 = vector.extract_strided_slice %37 {offsets = [0, 0, 56], sizes = [1, 8, 8], strides = [1, 1, 1]} : vector<1x8x96xbf16> to vector<1x8x8xbf16>
    %94 = vector.extract_strided_slice %37 {offsets = [0, 0, 88], sizes = [1, 8, 8], strides = [1, 1, 1]} : vector<1x8x96xbf16> to vector<1x8x8xbf16>
    "tpu.trace_start"() <{level = 10 : i32, message = "bnd,bmd->bnm"}> : () -> ()
    %cst_37 = arith.constant dense<0.000000e+00> : vector<1x8x8xf32>
    %95 = tpu.matmul %92, %93, %cst_37 {dimension_numbers = #tpu.dot_dimension_numbers<[2], [2], [1], [1], [0, 0, 0, 1, 1, 1], [0], [0]>} : vector<1x8x8xbf16>, vector<1x8x8xbf16>, vector<1x8x8xf32> -> vector<1x8x8xf32>
    "tpu.trace_stop"() : () -> ()
    %cst_38 = arith.constant dense<0xFF800000> : vector<1x8xf32>
    %96 = vector.multi_reduction <maximumf>, %95, %cst_38 [2] : vector<1x8x8xf32> to vector<1x8xf32>
    %97 = vector.shape_cast %96 : vector<1x8xf32> to vector<1x8x1xf32>
    %98 = vector.broadcast %97 : vector<1x8x1xf32> to vector<1x8x8xf32>
    %99 = arith.subf %95, %98 : vector<1x8x8xf32>
    %100 = math.exp %99 : vector<1x8x8xf32>
    %cst_39 = arith.constant dense<0.000000e+00> : vector<1x8xf32>
    %101 = vector.multi_reduction <add>, %100, %cst_39 [2] : vector<1x8x8xf32> to vector<1x8xf32>
    %102 = vector.shape_cast %101 : vector<1x8xf32> to vector<1x8x1xf32>
    %103 = tpu.reciprocal %102 {approx = true} : vector<1x8x1xf32> -> vector<1x8x1xf32>
    %104 = vector.broadcast %103 : vector<1x8x1xf32> to vector<1x8x8xf32>
    %105 = arith.mulf %100, %104 : vector<1x8x8xf32>
    %106 = arith.truncf %105 : vector<1x8x8xf32> to vector<1x8x8xbf16>
    "tpu.trace_start"() <{level = 10 : i32, message = "bnm,bmd->bnd"}> : () -> ()
    %cst_40 = arith.constant dense<0.000000e+00> : vector<1x8x8xf32>
    %107 = tpu.matmul %106, %94, %cst_40 {dimension_numbers = #tpu.dot_dimension_numbers<[2], [1], [1], [2], [0, 0, 0, 1, 1, 2], [0], [0]>} : vector<1x8x8xbf16>, vector<1x8x8xbf16>, vector<1x8x8xf32> -> vector<1x8x8xf32>
    "tpu.trace_stop"() : () -> ()
    %108 = arith.truncf %107 : vector<1x8x8xf32> to vector<1x8x8xbf16>
    %c0_41 = arith.constant 0 : index
    %c0_42 = arith.constant 0 : index
    %c24 = arith.constant 24 : index
    %109 = vector.load %arg10[%c0_41, %c0_42, %c24] : memref<1x8x32xbf16, #tpu.memory_space<vmem>>, vector<1x8x8xbf16>
    tpu.vector_store %arg10[%c0_41, %c0_42, %c24], %108 {strides = array<i32>} : memref<1x8x32xbf16, #tpu.memory_space<vmem>>, vector<1x8x8xbf16>,
    %c0_43 = arith.constant 0 : index
    %c0_44 = arith.constant 0 : index
    %c0_45 = arith.constant 0 : index
    %110 = vector.load %arg10[%c0_43, %c0_44, %c0_45] : memref<1x8x32xbf16, #tpu.memory_space<vmem>>, vector<1x8x32xbf16>
    %111 = vector.shape_cast %110 : vector<1x8x32xbf16> to vector<8x32xbf16>
    %c0_46 = arith.constant 0 : index
    %c0_47 = arith.constant 0 : index
    %112 = vector.load %arg4[%c0_46, %c0_47] : memref<32x32xbf16, #tpu.memory_space<vmem>>, vector<32x32xbf16>
    %cst_48 = arith.constant dense<0.000000e+00> : vector<8x32xf32>
    %113 = tpu.matmul %111, %112, %cst_48 {dimension_numbers = #tpu.dot_dimension_numbers<[1], [0], [0], [1], [0, 0, 1, 1], [], []>} : vector<8x32xbf16>, vector<32x32xbf16>, vector<8x32xf32> -> vector<8x32xf32>
    %114 = vector.broadcast %6 : vector<1x32xf32> to vector<8x32xf32>
    %115 = arith.addf %113, %114 : vector<8x32xf32>
    %116 = arith.addf %1, %115 : vector<8x32xf32>
    %cst_49 = arith.constant dense<0.000000e+00> : vector<8xf32>
    %117 = vector.multi_reduction <add>, %116, %cst_49 [1] : vector<8x32xf32> to vector<8xf32>
    %118 = vector.shape_cast %117 : vector<8xf32> to vector<8x1xf32>
    %cst_50 = arith.constant 3.200000e+01 : f32
    %119 = vector.broadcast %cst_50 : f32 to vector<8x1xf32>
    %120 = arith.divf %118, %119 : vector<8x1xf32>
    %121 = vector.broadcast %120 : vector<8x1xf32> to vector<8x32xf32>
    %122 = arith.subf %116, %121 : vector<8x32xf32>
    %123 = arith.mulf %122, %122 : vector<8x32xf32>
    %cst_51 = arith.constant dense<0.000000e+00> : vector<8xf32>
    %124 = vector.multi_reduction <add>, %123, %cst_51 [1] : vector<8x32xf32> to vector<8xf32>
    %125 = vector.shape_cast %124 : vector<8xf32> to vector<8x1xf32>
    %cst_52 = arith.constant 3.200000e+01 : f32
    %126 = vector.broadcast %cst_52 : f32 to vector<8x1xf32>
    %127 = arith.divf %125, %126 : vector<8x1xf32>
    %128 = vector.broadcast %120 : vector<8x1xf32> to vector<8x32xf32>
    %129 = arith.subf %116, %128 : vector<8x32xf32>
    %cst_53 = arith.constant 9.99999974E-6 : f32
    %130 = vector.broadcast %cst_53 : f32 to vector<8x1xf32>
    %131 = arith.addf %127, %130 : vector<8x1xf32>
    %132 = math.rsqrt %131 : vector<8x1xf32>
    %133 = vector.broadcast %132 : vector<8x1xf32> to vector<8x32xf32>
    %134 = arith.mulf %129, %133 : vector<8x32xf32>
    %135 = vector.broadcast %4 : vector<1x32xf32> to vector<8x32xf32>
    %136 = arith.mulf %134, %135 : vector<8x32xf32>
    %137 = vector.broadcast %5 : vector<1x32xf32> to vector<8x32xf32>
    %138 = arith.addf %136, %137 : vector<8x32xf32>
    %139 = arith.truncf %138 : vector<8x32xf32> to vector<8x32xbf16>
    %c0_54 = arith.constant 0 : index
    %c0_55 = arith.constant 0 : index
    %140 = vector.load %arg5[%c0_54, %c0_55] : memref<32x128xbf16, #tpu.memory_space<vmem>>, vector<32x128xbf16>
    %cst_56 = arith.constant dense<0.000000e+00> : vector<8x128xf32>
    %141 = tpu.matmul %139, %140, %cst_56 {dimension_numbers = #tpu.dot_dimension_numbers<[1], [0], [0], [1], [0, 0, 1, 1], [], []>} : vector<8x32xbf16>, vector<32x128xbf16>, vector<8x128xf32> -> vector<8x128xf32>
    %c0_57 = arith.constant 0 : index
    %c0_58 = arith.constant 0 : index
    %142 = vector.load %arg6[%c0_57, %c0_58] : memref<1x128xf32, #tpu.memory_space<vmem>>, vector<1x128xf32>
    %143 = vector.broadcast %142 : vector<1x128xf32> to vector<8x128xf32>
    %144 = arith.addf %141, %143 : vector<8x128xf32>
    %cst_59 = arith.constant 5.000000e-01 : f32
    %145 = vector.broadcast %cst_59 : f32 to vector<8x128xf32>
    %146 = arith.mulf %145, %144 : vector<8x128xf32>
    %cst_60 = arith.constant 0.707106769 : f32
    %147 = vector.broadcast %cst_60 : f32 to vector<8x128xf32>
    %148 = arith.mulf %144, %147 : vector<8x128xf32>
    %149 = math.erf %148 : vector<8x128xf32>
    %cst_61 = arith.constant 1.000000e+00 : f32
    %150 = vector.broadcast %cst_61 : f32 to vector<8x128xf32>
    %151 = arith.addf %150, %149 : vector<8x128xf32>
    %152 = arith.mulf %146, %151 : vector<8x128xf32>
    %153 = arith.truncf %152 : vector<8x128xf32> to vector<8x128xbf16>
    %c0_62 = arith.constant 0 : index
    %c0_63 = arith.constant 0 : index
    %154 = vector.load %arg7[%c0_62, %c0_63] : memref<128x32xbf16, #tpu.memory_space<vmem>>, vector<128x32xbf16>
    %cst_64 = arith.constant dense<0.000000e+00> : vector<8x32xf32>
    %155 = tpu.matmul %153, %154, %cst_64 {dimension_numbers = #tpu.dot_dimension_numbers<[1], [0], [0], [1], [0, 0, 1, 1], [], []>} : vector<8x128xbf16>, vector<128x32xbf16>, vector<8x32xf32> -> vector<8x32xf32>
    %156 = vector.broadcast %7 : vector<1x32xf32> to vector<8x32xf32>
    %157 = arith.addf %155, %156 : vector<8x32xf32>
    %158 = arith.addf %157, %116 : vector<8x32xf32>
    %159 = vector.shape_cast %158 : vector<8x32xf32> to vector<1x8x32xf32>
    %c0_65 = arith.constant 0 : index
    %c0_66 = arith.constant 0 : index
    %c0_67 = arith.constant 0 : index
    %160 = vector.load %arg9[%c0_65, %c0_66, %c0_67] : memref<1x8x32xf32, #tpu.memory_space<vmem>>, vector<1x8x32xf32>
    tpu.vector_store %arg9[%c0_65, %c0_66, %c0_67], %159 {strides = array<i32>} : memref<1x8x32xf32, #tpu.memory_space<vmem>>, vector<1x8x32xf32>,
    return
  }
  func.func @transform_0(%arg0: i32) -> (i32, i32, i32) {
    %c0_i32 = arith.constant 0 : i32
    %c0_i32_0 = arith.constant 0 : i32
    %c0_i32_1 = arith.constant 0 : i32
    return %arg0, %c0_i32, %c0_i32_0 : i32, i32, i32
  }
  func.func @transform_1(%arg0: i32) -> (i32, i32) {
    %c0_i32 = arith.constant 0 : i32
    %c0_i32_0 = arith.constant 0 : i32
    %c0_i32_1 = arith.constant 0 : i32
    return %c0_i32, %c0_i32_0 : i32, i32
  }
  func.func @transform_2(%arg0: i32) -> (i32, i32) {
    %c0_i32 = arith.constant 0 : i32
    %c0_i32_0 = arith.constant 0 : i32
    %c0_i32_1 = arith.constant 0 : i32
    return %c0_i32, %c0_i32_0 : i32, i32
  }
  func.func @transform_3(%arg0: i32) -> (i32, i32) {
    %c0_i32 = arith.constant 0 : i32
    %c0_i32_0 = arith.constant 0 : i32
    %c0_i32_1 = arith.constant 0 : i32
    return %c0_i32, %c0_i32_0 : i32, i32
  }
  func.func @transform_4(%arg0: i32) -> (i32, i32) {
    %c0_i32 = arith.constant 0 : i32
    %c0_i32_0 = arith.constant 0 : i32
    %c0_i32_1 = arith.constant 0 : i32
    return %c0_i32, %c0_i32_0 : i32, i32
  }
  func.func @transform_5(%arg0: i32) -> (i32, i32) {
    %c0_i32 = arith.constant 0 : i32
    %c0_i32_0 = arith.constant 0 : i32
    %c0_i32_1 = arith.constant 0 : i32
    return %c0_i32, %c0_i32_0 : i32, i32
  }
  func.func @transform_6(%arg0: i32) -> (i32, i32) {
    %c0_i32 = arith.constant 0 : i32
    %c0_i32_0 = arith.constant 0 : i32
    %c0_i32_1 = arith.constant 0 : i32
    return %c0_i32, %c0_i32_0 : i32, i32
  }
  func.func @transform_7(%arg0: i32) -> (i32, i32) {
    %c0_i32 = arith.constant 0 : i32
    %c0_i32_0 = arith.constant 0 : i32
    %c0_i32_1 = arith.constant 0 : i32
    return %c0_i32, %c0_i32_0 : i32, i32
  }
  func.func @transform_8(%arg0: i32) -> (i32, i32, i32) {
    %c0_i32 = arith.constant 0 : i32
    %c0_i32_0 = arith.constant 0 : i32
    %c0_i32_1 = arith.constant 0 : i32
    return %arg0, %c0_i32, %c0_i32_0 : i32, i32, i32
  }
}

module attributes {stable_mosaic.version = 11 : i64} {
  func.func @transformer_encoder_kernel(%arg0: i32, %arg1: memref<1x8x32xf32, #tpu.memory_space<vmem>>, %arg2: memref<32x96xbf16, #tpu.memory_space<vmem>>, %arg3: memref<1x96xf32, #tpu.memory_space<vmem>>, %arg4: memref<32x32xbf16, #tpu.memory_space<vmem>>, %arg5: memref<32x128xbf16, #tpu.memory_space<vmem>>, %arg6: memref<1x128xf32, #tpu.memory_space<vmem>>, %arg7: memref<128x32xbf16, #tpu.memory_space<vmem>>, %arg8: memref<6x32xf32, #tpu.memory_space<vmem>>, %arg9: memref<1x8x32xf32, #tpu.memory_space<vmem>>, %arg10: memref<1x8x32xbf16, #tpu.memory_space<vmem>>) attributes {dimension_semantics = [#tpu.dimension_semantics<parallel>], iteration_bounds = array<i64: 2>, scalar_prefetch = 0 : i64, scratch_operands = 1 : i64, tpu.core_type = #tpu.core_type<tc>, window_params = [{transform_indices = @transform_0, window_bounds = array<i64: 1, 8, 32>}, {pipeline_mode = #tpu.pipeline_mode<synchronous>, transform_indices = @transform_1, window_bounds = array<i64: 32, 96>}, {pipeline_mode = #tpu.pipeline_mode<synchronous>, transform_indices = @transform_2, window_bounds = array<i64: 1, 96>}, {pipeline_mode = #tpu.pipeline_mode<synchronous>, transform_indices = @transform_3, window_bounds = array<i64: 32, 32>}, {pipeline_mode = #tpu.pipeline_mode<synchronous>, transform_indices = @transform_4, window_bounds = array<i64: 32, 128>}, {pipeline_mode = #tpu.pipeline_mode<synchronous>, transform_indices = @transform_5, window_bounds = array<i64: 1, 128>}, {pipeline_mode = #tpu.pipeline_mode<synchronous>, transform_indices = @transform_6, window_bounds = array<i64: 128, 32>}, {pipeline_mode = #tpu.pipeline_mode<synchronous>, transform_indices = @transform_7, window_bounds = array<i64: 6, 32>}, {transform_indices = @transform_8, window_bounds = array<i64: 1, 8, 32>}]} {
    %c0 = arith.constant 0 : index
    %c0_0 = arith.constant 0 : index
    %c0_1 = arith.constant 0 : index
    %0 = vector.load %arg1[%c0, %c0_0, %c0_1] : memref<1x8x32xf32, #tpu.memory_space<vmem>>, vector<1x8x32xf32>
    %1 = vector.shape_cast %0 : vector<1x8x32xf32> to vector<8x32xf32>
    %c0_2 = arith.constant 0 : index
    %c0_3 = arith.constant 0 : index
    %2 = vector.load %arg8[%c0_2, %c0_3] : memref<6x32xf32, #tpu.memory_space<vmem>>, vector<1x32xf32>
    %c1 = arith.constant 1 : index
    %c0_4 = arith.constant 0 : index
    %3 = vector.load %arg8[%c1, %c0_4] : memref<6x32xf32, #tpu.memory_space<vmem>>, vector<1x32xf32>
    %c2 = arith.constant 2 : index
    %c0_5 = arith.constant 0 : index
    %4 = vector.load %arg8[%c2, %c0_5] : memref<6x32xf32, #tpu.memory_space<vmem>>, vector<1x32xf32>
    %c3 = arith.constant 3 : index
    %c0_6 = arith.constant 0 : index
    %5 = vector.load %arg8[%c3, %c0_6] : memref<6x32xf32, #tpu.memory_space<vmem>>, vector<1x32xf32>
    %c4 = arith.constant 4 : index
    %c0_7 = arith.constant 0 : index
    %6 = vector.load %arg8[%c4, %c0_7] : memref<6x32xf32, #tpu.memory_space<vmem>>, vector<1x32xf32>
    %c5 = arith.constant 5 : index
    %c0_8 = arith.constant 0 : index
    %7 = vector.load %arg8[%c5, %c0_8] : memref<6x32xf32, #tpu.memory_space<vmem>>, vector<1x32xf32>
    %cst = arith.constant dense<0.000000e+00> : vector<8xf32>
    %8 = vector.multi_reduction <add>, %1, %cst [1] : vector<8x32xf32> to vector<8xf32>
    %9 = vector.shape_cast %8 : vector<8xf32> to vector<8x1xf32>
    %cst_9 = arith.constant 3.200000e+01 : f32
    %10 = vector.broadcast %cst_9 : f32 to vector<8x1xf32>
    %11 = arith.divf %9, %10 : vector<8x1xf32>
    %12 = vector.broadcast %11 : vector<8x1xf32> to vector<8x32xf32>
    %13 = arith.subf %1, %12 : vector<8x32xf32>
    %14 = arith.mulf %13, %13 : vector<8x32xf32>
    %cst_10 = arith.constant dense<0.000000e+00> : vector<8xf32>
    %15 = vector.multi_reduction <add>, %14, %cst_10 [1] : vector<8x32xf32> to vector<8xf32>
    %16 = vector.shape_cast %15 : vector<8xf32> to vector<8x1xf32>
    %cst_11 = arith.constant 3.200000e+01 : f32
    %17 = vector.broadcast %cst_11 : f32 to vector<8x1xf32>
    %18 = arith.divf %16, %17 : vector<8x1xf32>
    %19 = vector.broadcast %11 : vector<8x1xf32> to vector<8x32xf32>
    %20 = arith.subf %1, %19 : vector<8x32xf32>
    %cst_12 = arith.constant 9.99999974E-6 : f32
    %21 = vector.broadcast %cst_12 : f32 to vector<8x1xf32>
    %22 = arith.addf %18, %21 : vector<8x1xf32>
    %23 = math.rsqrt %22 : vector<8x1xf32>
    %24 = vector.broadcast %23 : vector<8x1xf32> to vector<8x32xf32>
    %25 = arith.mulf %20, %24 : vector<8x32xf32>
    %26 = vector.broadcast %2 : vector<1x32xf32> to vector<8x32xf32>
    %27 = arith.mulf %25, %26 : vector<8x32xf32>
    %28 = vector.broadcast %3 : vector<1x32xf32> to vector<8x32xf32>
    %29 = arith.addf %27, %28 : vector<8x32xf32>
    %30 = arith.truncf %29 : vector<8x32xf32> to vector<8x32xbf16>
    %c0_13 = arith.constant 0 : index
    %c0_14 = arith.constant 0 : index
    %31 = vector.load %arg2[%c0_13, %c0_14] : memref<32x96xbf16, #tpu.memory_space<vmem>>, vector<32x96xbf16>
    %cst_15 = arith.constant dense<0.000000e+00> : vector<8x96xf32>
    %32 = tpu.matmul %30, %31, %cst_15 {dimension_numbers = #tpu.dot_dimension_numbers<[1], [0], [0], [1], [0, 0, 1, 1], [], []>} : vector<8x32xbf16>, vector<32x96xbf16>, vector<8x96xf32> -> vector<8x96xf32>
    %c0_16 = arith.constant 0 : index
    %c0_17 = arith.constant 0 : index
    %33 = vector.load %arg3[%c0_16, %c0_17] : memref<1x96xf32, #tpu.memory_space<vmem>>, vector<1x96xf32>
    %34 = vector.broadcast %33 : vector<1x96xf32> to vector<8x96xf32>
    %35 = arith.addf %32, %34 : vector<8x96xf32>
    %36 = arith.truncf %35 : vector<8x96xf32> to vector<8x96xbf16>
    %37 = vector.shape_cast %36 : vector<8x96xbf16> to vector<1x8x96xbf16>
    %38 = vector.extract_strided_slice %37 {offsets = [0, 0, 0], sizes = [1, 8, 8], strides = [1, 1, 1]} : vector<1x8x96xbf16> to vector<1x8x8xbf16>
    %39 = vector.extract_strided_slice %37 {offsets = [0, 0, 32], sizes = [1, 8, 8], strides = [1, 1, 1]} : vector<1x8x96xbf16> to vector<1x8x8xbf16>
    %40 = vector.extract_strided_slice %37 {offsets = [0, 0, 64], sizes = [1, 8, 8], strides = [1, 1, 1]} : vector<1x8x96xbf16> to vector<1x8x8xbf16>
    "tpu.trace_start"() <{level = 10 : i32, message = "bnd,bmd->bnm"}> : () -> ()
    %cst_18 = arith.constant dense<0.000000e+00> : vector<1x8x8xf32>
    %41 = tpu.matmul %38, %39, %cst_18 {dimension_numbers = #tpu.dot_dimension_numbers<[2], [2], [1], [1], [0, 0, 0, 1, 1, 1], [0], [0]>} : vector<1x8x8xbf16>, vector<1x8x8xbf16>, vector<1x8x8xf32> -> vector<1x8x8xf32>
    "tpu.trace_stop"() : () -> ()
    %cst_19 = arith.constant dense<0xFF800000> : vector<1x8xf32>
    %42 = vector.multi_reduction <maximumf>, %41, %cst_19 [2] : vector<1x8x8xf32> to vector<1x8xf32>
    %43 = vector.shape_cast %42 : vector<1x8xf32> to vector<1x8x1xf32>
    %44 = vector.broadcast %43 : vector<1x8x1xf32> to vector<1x8x8xf32>
    %45 = arith.subf %41, %44 : vector<1x8x8xf32>
    %46 = math.exp %45 : vector<1x8x8xf32>
    %cst_20 = arith.constant dense<0.000000e+00> : vector<1x8xf32>
    %47 = vector.multi_reduction <add>, %46, %cst_20 [2] : vector<1x8x8xf32> to vector<1x8xf32>
    %48 = vector.shape_cast %47 : vector<1x8xf32> to vector<1x8x1xf32>
    %49 = tpu.reciprocal %48 {approx = true} : vector<1x8x1xf32> -> vector<1x8x1xf32>
    %50 = vector.broadcast %49 : vector<1x8x1xf32> to vector<1x8x8xf32>
    %51 = arith.mulf %46, %50 : vector<1x8x8xf32>
    %52 = arith.truncf %51 : vector<1x8x8xf32> to vector<1x8x8xbf16>
    "tpu.trace_start"() <{level = 10 : i32, message = "bnm,bmd->bnd"}> : () -> ()
    %cst_21 = arith.constant dense<0.000000e+00> : vector<1x8x8xf32>
    %53 = tpu.matmul %52, %40, %cst_21 {dimension_numbers = #tpu.dot_dimension_numbers<[2], [1], [1], [2], [0, 0, 0, 1, 1, 2], [0], [0]>} : vector<1x8x8xbf16>, vector<1x8x8xbf16>, vector<1x8x8xf32> -> vector<1x8x8xf32>
    "tpu.trace_stop"() : () -> ()
    %54 = arith.truncf %53 : vector<1x8x8xf32> to vector<1x8x8xbf16>
    %c0_22 = arith.constant 0 : index
    %c0_23 = arith.constant 0 : index
    %c0_24 = arith.constant 0 : index
    %55 = vector.load %arg10[%c0_22, %c0_23, %c0_24] : memref<1x8x32xbf16, #tpu.memory_space<vmem>>, vector<1x8x8xbf16>
    tpu.vector_store %arg10[%c0_22, %c0_23, %c0_24], %54 {strides = array<i32>} : memref<1x8x32xbf16, #tpu.memory_space<vmem>>, vector<1x8x8xbf16>,
    %56 = vector.extract_strided_slice %37 {offsets = [0, 0, 8], sizes = [1, 8, 8], strides = [1, 1, 1]} : vector<1x8x96xbf16> to vector<1x8x8xbf16>
    %57 = vector.extract_strided_slice %37 {offsets = [0, 0, 40], sizes = [1, 8, 8], strides = [1, 1, 1]} : vector<1x8x96xbf16> to vector<1x8x8xbf16>
    %58 = vector.extract_strided_slice %37 {offsets = [0, 0, 72], sizes = [1, 8, 8], strides = [1, 1, 1]} : vector<1x8x96xbf16> to vector<1x8x8xbf16>
    "tpu.trace_start"() <{level = 10 : i32, message = "bnd,bmd->bnm"}> : () -> ()
    %cst_25 = arith.constant dense<0.000000e+00> : vector<1x8x8xf32>
    %59 = tpu.matmul %56, %57, %cst_25 {dimension_numbers = #tpu.dot_dimension_numbers<[2], [2], [1], [1], [0, 0, 0, 1, 1, 1], [0], [0]>} : vector<1x8x8xbf16>, vector<1x8x8xbf16>, vector<1x8x8xf32> -> vector<1x8x8xf32>
    "tpu.trace_stop"() : () -> ()
    %cst_26 = arith.constant dense<0xFF800000> : vector<1x8xf32>
    %60 = vector.multi_reduction <maximumf>, %59, %cst_26 [2] : vector<1x8x8xf32> to vector<1x8xf32>
    %61 = vector.shape_cast %60 : vector<1x8xf32> to vector<1x8x1xf32>
    %62 = vector.broadcast %61 : vector<1x8x1xf32> to vector<1x8x8xf32>
    %63 = arith.subf %59, %62 : vector<1x8x8xf32>
    %64 = math.exp %63 : vector<1x8x8xf32>
    %cst_27 = arith.constant dense<0.000000e+00> : vector<1x8xf32>
    %65 = vector.multi_reduction <add>, %64, %cst_27 [2] : vector<1x8x8xf32> to vector<1x8xf32>
    %66 = vector.shape_cast %65 : vector<1x8xf32> to vector<1x8x1xf32>
    %67 = tpu.reciprocal %66 {approx = true} : vector<1x8x1xf32> -> vector<1x8x1xf32>
    %68 = vector.broadcast %67 : vector<1x8x1xf32> to vector<1x8x8xf32>
    %69 = arith.mulf %64, %68 : vector<1x8x8xf32>
    %70 = arith.truncf %69 : vector<1x8x8xf32> to vector<1x8x8xbf16>
    "tpu.trace_start"() <{level = 10 : i32, message = "bnm,bmd->bnd"}> : () -> ()
    %cst_28 = arith.constant dense<0.000000e+00> : vector<1x8x8xf32>
    %71 = tpu.matmul %70, %58, %cst_28 {dimension_numbers = #tpu.dot_dimension_numbers<[2], [1], [1], [2], [0, 0, 0, 1, 1, 2], [0], [0]>} : vector<1x8x8xbf16>, vector<1x8x8xbf16>, vector<1x8x8xf32> -> vector<1x8x8xf32>
    "tpu.trace_stop"() : () -> ()
    %72 = arith.truncf %71 : vector<1x8x8xf32> to vector<1x8x8xbf16>
    %c0_29 = arith.constant 0 : index
    %c0_30 = arith.constant 0 : index
    %c8 = arith.constant 8 : index
    %73 = vector.load %arg10[%c0_29, %c0_30, %c8] : memref<1x8x32xbf16, #tpu.memory_space<vmem>>, vector<1x8x8xbf16>
    tpu.vector_store %arg10[%c0_29, %c0_30, %c8], %72 {strides = array<i32>} : memref<1x8x32xbf16, #tpu.memory_space<vmem>>, vector<1x8x8xbf16>,
    %74 = vector.extract_strided_slice %37 {offsets = [0, 0, 16], sizes = [1, 8, 8], strides = [1, 1, 1]} : vector<1x8x96xbf16> to vector<1x8x8xbf16>
    %75 = vector.extract_strided_slice %37 {offsets = [0, 0, 48], sizes = [1, 8, 8], strides = [1, 1, 1]} : vector<1x8x96xbf16> to vector<1x8x8xbf16>
    %76 = vector.extract_strided_slice %37 {offsets = [0, 0, 80], sizes = [1, 8, 8], strides = [1, 1, 1]} : vector<1x8x96xbf16> to vector<1x8x8xbf16>
    "tpu.trace_start"() <{level = 10 : i32, message = "bnd,bmd->bnm"}> : () -> ()
    %cst_31 = arith.constant dense<0.000000e+00> : vector<1x8x8xf32>
    %77 = tpu.matmul %74, %75, %cst_31 {dimension_numbers = #tpu.dot_dimension_numbers<[2], [2], [1], [1], [0, 0, 0, 1, 1, 1], [0], [0]>} : vector<1x8x8xbf16>, vector<1x8x8xbf16>, vector<1x8x8xf32> -> vector<1x8x8xf32>
    "tpu.trace_stop"() : () -> ()
    %cst_32 = arith.constant dense<0xFF800000> : vector<1x8xf32>
    %78 = vector.multi_reduction <maximumf>, %77, %cst_32 [2] : vector<1x8x8xf32> to vector<1x8xf32>
    %79 = vector.shape_cast %78 : vector<1x8xf32> to vector<1x8x1xf32>
    %80 = vector.broadcast %79 : vector<1x8x1xf32> to vector<1x8x8xf32>
    %81 = arith.subf %77, %80 : vector<1x8x8xf32>
    %82 = math.exp %81 : vector<1x8x8xf32>
    %cst_33 = arith.constant dense<0.000000e+00> : vector<1x8xf32>
    %83 = vector.multi_reduction <add>, %82, %cst_33 [2] : vector<1x8x8xf32> to vector<1x8xf32>
    %84 = vector.shape_cast %83 : vector<1x8xf32> to vector<1x8x1xf32>
    %85 = tpu.reciprocal %84 {approx = true} : vector<1x8x1xf32> -> vector<1x8x1xf32>
    %86 = vector.broadcast %85 : vector<1x8x1xf32> to vector<1x8x8xf32>
    %87 = arith.mulf %82, %86 : vector<1x8x8xf32>
    %88 = arith.truncf %87 : vector<1x8x8xf32> to vector<1x8x8xbf16>
    "tpu.trace_start"() <{level = 10 : i32, message = "bnm,bmd->bnd"}> : () -> ()
    %cst_34 = arith.constant dense<0.000000e+00> : vector<1x8x8xf32>
    %89 = tpu.matmul %88, %76, %cst_34 {dimension_numbers = #tpu.dot_dimension_numbers<[2], [1], [1], [2], [0, 0, 0, 1, 1, 2], [0], [0]>} : vector<1x8x8xbf16>, vector<1x8x8xbf16>, vector<1x8x8xf32> -> vector<1x8x8xf32>
    "tpu.trace_stop"() : () -> ()
    %90 = arith.truncf %89 : vector<1x8x8xf32> to vector<1x8x8xbf16>
    %c0_35 = arith.constant 0 : index
    %c0_36 = arith.constant 0 : index
    %c16 = arith.constant 16 : index
    %91 = vector.load %arg10[%c0_35, %c0_36, %c16] : memref<1x8x32xbf16, #tpu.memory_space<vmem>>, vector<1x8x8xbf16>
    tpu.vector_store %arg10[%c0_35, %c0_36, %c16], %90 {strides = array<i32>} : memref<1x8x32xbf16, #tpu.memory_space<vmem>>, vector<1x8x8xbf16>,
    %92 = vector.extract_strided_slice %37 {offsets = [0, 0, 24], sizes = [1, 8, 8], strides = [1, 1, 1]} : vector<1x8x96xbf16> to vector<1x8x8xbf16>
    %93 = vector.extract_strided_slice %37 {offsets = [0, 0, 56], sizes = [1, 8, 8], strides = [1, 1, 1]} : vector<1x8x96xbf16> to vector<1x8x8xbf16>
    %94 = vector.extract_strided_slice %37 {offsets = [0, 0, 88], sizes = [1, 8, 8], strides = [1, 1, 1]} : vector<1x8x96xbf16> to vector<1x8x8xbf16>
    "tpu.trace_start"() <{level = 10 : i32, message = "bnd,bmd->bnm"}> : () -> ()
    %cst_37 = arith.constant dense<0.000000e+00> : vector<1x8x8xf32>
    %95 = tpu.matmul %92, %93, %cst_37 {dimension_numbers = #tpu.dot_dimension_numbers<[2], [2], [1], [1], [0, 0, 0, 1, 1, 1], [0], [0]>} : vector<1x8x8xbf16>, vector<1x8x8xbf16>, vector<1x8x8xf32> -> vector<1x8x8xf32>
    "tpu.trace_stop"() : () -> ()
    %cst_38 = arith.constant dense<0xFF800000> : vector<1x8xf32>
    %96 = vector.multi_reduction <maximumf>, %95, %cst_38 [2] : vector<1x8x8xf32> to vector<1x8xf32>
    %97 = vector.shape_cast %96 : vector<1x8xf32> to vector<1x8x1xf32>
    %98 = vector.broadcast %97 : vector<1x8x1xf32> to vector<1x8x8xf32>
    %99 = arith.subf %95, %98 : vector<1x8x8xf32>
    %100 = math.exp %99 : vector<1x8x8xf32>
    %cst_39 = arith.constant dense<0.000000e+00> : vector<1x8xf32>
    %101 = vector.multi_reduction <add>, %100, %cst_39 [2] : vector<1x8x8xf32> to vector<1x8xf32>
    %102 = vector.shape_cast %101 : vector<1x8xf32> to vector<1x8x1xf32>
    %103 = tpu.reciprocal %102 {approx = true} : vector<1x8x1xf32> -> vector<1x8x1xf32>
    %104 = vector.broadcast %103 : vector<1x8x1xf32> to vector<1x8x8xf32>
    %105 = arith.mulf %100, %104 : vector<1x8x8xf32>
    %106 = arith.truncf %105 : vector<1x8x8xf32> to vector<1x8x8xbf16>
    "tpu.trace_start"() <{level = 10 : i32, message = "bnm,bmd->bnd"}> : () -> ()
    %cst_40 = arith.constant dense<0.000000e+00> : vector<1x8x8xf32>
    %107 = tpu.matmul %106, %94, %cst_40 {dimension_numbers = #tpu.dot_dimension_numbers<[2], [1], [1], [2], [0, 0, 0, 1, 1, 2], [0], [0]>} : vector<1x8x8xbf16>, vector<1x8x8xbf16>, vector<1x8x8xf32> -> vector<1x8x8xf32>
    "tpu.trace_stop"() : () -> ()
    %108 = arith.truncf %107 : vector<1x8x8xf32> to vector<1x8x8xbf16>
    %c0_41 = arith.constant 0 : index
    %c0_42 = arith.constant 0 : index
    %c24 = arith.constant 24 : index
    %109 = vector.load %arg10[%c0_41, %c0_42, %c24] : memref<1x8x32xbf16, #tpu.memory_space<vmem>>, vector<1x8x8xbf16>
    tpu.vector_store %arg10[%c0_41, %c0_42, %c24], %108 {strides = array<i32>} : memref<1x8x32xbf16, #tpu.memory_space<vmem>>, vector<1x8x8xbf16>,
    %c0_43 = arith.constant 0 : index
    %c0_44 = arith.constant 0 : index
    %c0_45 = arith.constant 0 : index
    %110 = vector.load %arg10[%c0_43, %c0_44, %c0_45] : memref<1x8x32xbf16, #tpu.memory_space<vmem>>, vector<1x8x32xbf16>
    %111 = vector.shape_cast %110 : vector<1x8x32xbf16> to vector<8x32xbf16>
    %c0_46 = arith.constant 0 : index
    %c0_47 = arith.constant 0 : index
    %112 = vector.load %arg4[%c0_46, %c0_47] : memref<32x32xbf16, #tpu.memory_space<vmem>>, vector<32x32xbf16>
    %cst_48 = arith.constant dense<0.000000e+00> : vector<8x32xf32>
    %113 = tpu.matmul %111, %112, %cst_48 {dimension_numbers = #tpu.dot_dimension_numbers<[1], [0], [0], [1], [0, 0, 1, 1], [], []>} : vector<8x32xbf16>, vector<32x32xbf16>, vector<8x32xf32> -> vector<8x32xf32>
    %114 = vector.broadcast %6 : vector<1x32xf32> to vector<8x32xf32>
    %115 = arith.addf %113, %114 : vector<8x32xf32>
    %116 = arith.addf %1, %115 : vector<8x32xf32>
    %cst_49 = arith.constant dense<0.000000e+00> : vector<8xf32>
    %117 = vector.multi_reduction <add>, %116, %cst_49 [1] : vector<8x32xf32> to vector<8xf32>
    %118 = vector.shape_cast %117 : vector<8xf32> to vector<8x1xf32>
    %cst_50 = arith.constant 3.200000e+01 : f32
    %119 = vector.broadcast %cst_50 : f32 to vector<8x1xf32>
    %120 = arith.divf %118, %119 : vector<8x1xf32>
    %121 = vector.broadcast %120 : vector<8x1xf32> to vector<8x32xf32>
    %122 = arith.subf %116, %121 : vector<8x32xf32>
    %123 = arith.mulf %122, %122 : vector<8x32xf32>
    %cst_51 = arith.constant dense<0.000000e+00> : vector<8xf32>
    %124 = vector.multi_reduction <add>, %123, %cst_51 [1] : vector<8x32xf32> to vector<8xf32>
    %125 = vector.shape_cast %124 : vector<8xf32> to vector<8x1xf32>
    %cst_52 = arith.constant 3.200000e+01 : f32
    %126 = vector.broadcast %cst_52 : f32 to vector<8x1xf32>
    %127 = arith.divf %125, %126 : vector<8x1xf32>
    %128 = vector.broadcast %120 : vector<8x1xf32> to vector<8x32xf32>
    %129 = arith.subf %116, %128 : vector<8x32xf32>
    %cst_53 = arith.constant 9.99999974E-6 : f32
    %130 = vector.broadcast %cst_53 : f32 to vector<8x1xf32>
    %131 = arith.addf %127, %130 : vector<8x1xf32>
    %132 = math.rsqrt %131 : vector<8x1xf32>
    %133 = vector.broadcast %132 : vector<8x1xf32> to vector<8x32xf32>
    %134 = arith.mulf %129, %133 : vector<8x32xf32>
    %135 = vector.broadcast %4 : vector<1x32xf32> to vector<8x32xf32>
    %136 = arith.mulf %134, %135 : vector<8x32xf32>
    %137 = vector.broadcast %5 : vector<1x32xf32> to vector<8x32xf32>
    %138 = arith.addf %136, %137 : vector<8x32xf32>
    %139 = arith.truncf %138 : vector<8x32xf32> to vector<8x32xbf16>
    %c0_54 = arith.constant 0 : index
    %c0_55 = arith.constant 0 : index
    %140 = vector.load %arg5[%c0_54, %c0_55] : memref<32x128xbf16, #tpu.memory_space<vmem>>, vector<32x128xbf16>
    %cst_56 = arith.constant dense<0.000000e+00> : vector<8x128xf32>
    %141 = tpu.matmul %139, %140, %cst_56 {dimension_numbers = #tpu.dot_dimension_numbers<[1], [0], [0], [1], [0, 0, 1, 1], [], []>} : vector<8x32xbf16>, vector<32x128xbf16>, vector<8x128xf32> -> vector<8x128xf32>
    %c0_57 = arith.constant 0 : index
    %c0_58 = arith.constant 0 : index
    %142 = vector.load %arg6[%c0_57, %c0_58] : memref<1x128xf32, #tpu.memory_space<vmem>>, vector<1x128xf32>
    %143 = vector.broadcast %142 : vector<1x128xf32> to vector<8x128xf32>
    %144 = arith.addf %141, %143 : vector<8x128xf32>
    %cst_59 = arith.constant 5.000000e-01 : f32
    %145 = vector.broadcast %cst_59 : f32 to vector<8x128xf32>
    %146 = arith.mulf %145, %144 : vector<8x128xf32>
    %cst_60 = arith.constant 0.707106769 : f32
    %147 = vector.broadcast %cst_60 : f32 to vector<8x128xf32>
    %148 = arith.mulf %144, %147 : vector<8x128xf32>
    %149 = math.erf %148 : vector<8x128xf32>
    %cst_61 = arith.constant 1.000000e+00 : f32
    %150 = vector.broadcast %cst_61 : f32 to vector<8x128xf32>
    %151 = arith.addf %150, %149 : vector<8x128xf32>
    %152 = arith.mulf %146, %151 : vector<8x128xf32>
    %153 = arith.truncf %152 : vector<8x128xf32> to vector<8x128xbf16>
    %c0_62 = arith.constant 0 : index
    %c0_63 = arith.constant 0 : index
    %154 = vector.load %arg7[%c0_62, %c0_63] : memref<128x32xbf16, #tpu.memory_space<vmem>>, vector<128x32xbf16>
    %cst_64 = arith.constant dense<0.000000e+00> : vector<8x32xf32>
    %155 = tpu.matmul %153, %154, %cst_64 {dimension_numbers = #tpu.dot_dimension_numbers<[1], [0], [0], [1], [0, 0, 1, 1], [], []>} : vector<8x128xbf16>, vector<128x32xbf16>, vector<8x32xf32> -> vector<8x32xf32>
    %156 = vector.broadcast %7 : vector<1x32xf32> to vector<8x32xf32>
    %157 = arith.addf %155, %156 : vector<8x32xf32>
    %158 = arith.addf %157, %116 : vector<8x32xf32>
    %159 = vector.shape_cast %158 : vector<8x32xf32> to vector<1x8x32xf32>
    %c0_65 = arith.constant 0 : index
    %c0_66 = arith.constant 0 : index
    %c0_67 = arith.constant 0 : index
    %160 = vector.load %arg9[%c0_65, %c0_66, %c0_67] : memref<1x8x32xf32, #tpu.memory_space<vmem>>, vector<1x8x32xf32>
    tpu.vector_store %arg9[%c0_65, %c0_66, %c0_67], %159 {strides = array<i32>} : memref<1x8x32xf32, #tpu.memory_space<vmem>>, vector<1x8x32xf32>,
    return
  }
  func.func @transform_0(%arg0: i32) -> (i32, i32, i32) {
    %c0_i32 = arith.constant 0 : i32
    %c0_i32_0 = arith.constant 0 : i32
    %c0_i32_1 = arith.constant 0 : i32
    return %arg0, %c0_i32, %c0_i32_0 : i32, i32, i32
  }
  func.func @transform_1(%arg0: i32) -> (i32, i32) {
    %c0_i32 = arith.constant 0 : i32
    %c0_i32_0 = arith.constant 0 : i32
    %c0_i32_1 = arith.constant 0 : i32
    return %c0_i32, %c0_i32_0 : i32, i32
  }
  func.func @transform_2(%arg0: i32) -> (i32, i32) {
    %c0_i32 = arith.constant 0 : i32
    %c0_i32_0 = arith.constant 0 : i32
    %c0_i32_1 = arith.constant 0 : i32
    return %c0_i32, %c0_i32_0 : i32, i32
  }
  func.func @transform_3(%arg0: i32) -> (i32, i32) {
    %c0_i32 = arith.constant 0 : i32
    %c0_i32_0 = arith.constant 0 : i32
    %c0_i32_1 = arith.constant 0 : i32
    return %c0_i32, %c0_i32_0 : i32, i32
  }
  func.func @transform_4(%arg0: i32) -> (i32, i32) {
    %c0_i32 = arith.constant 0 : i32
    %c0_i32_0 = arith.constant 0 : i32
    %c0_i32_1 = arith.constant 0 : i32
    return %c0_i32, %c0_i32_0 : i32, i32
  }
  func.func @transform_5(%arg0: i32) -> (i32, i32) {
    %c0_i32 = arith.constant 0 : i32
    %c0_i32_0 = arith.constant 0 : i32
    %c0_i32_1 = arith.constant 0 : i32
    return %c0_i32, %c0_i32_0 : i32, i32
  }
  func.func @transform_6(%arg0: i32) -> (i32, i32) {
    %c0_i32 = arith.constant 0 : i32
    %c0_i32_0 = arith.constant 0 : i32
    %c0_i32_1 = arith.constant 0 : i32
    return %c0_i32, %c0_i32_0 : i32, i32
  }
  func.func @transform_7(%arg0: i32) -> (i32, i32) {
    %c0_i32 = arith.constant 0 : i32
    %c0_i32_0 = arith.constant 0 : i32
    %c0_i32_1 = arith.constant 0 : i32
    return %c0_i32, %c0_i32_0 : i32, i32
  }
  func.func @transform_8(%arg0: i32) -> (i32, i32, i32) {
    %c0_i32 = arith.constant 0 : i32
    %c0_i32_0 = arith.constant 0 : i32
    %c0_i32_1 = arith.constant 0 : i32
    return %arg0, %c0_i32, %c0_i32_0 : i32, i32, i32
  }
}

</mosaic_0001>

<bundles_post_ra>
// kernel: tpu_custom_call.1
= control target key start
LH: loop header
LB: loop body
LE: loop exit
PB: predicated region body
PF: predicated region fallthrough
CT: control target
= control target key end

     0   :  { %13 = vsyncpa [#allocation4], 0  ;;  %s1877_s0 = inlined_call_operand.vmem [shape: f32[2,8,32], index: 0, kind: input, shape index: {}]   ;;  %s1878_s1 = inlined_call_operand.vmem [shape: bf16[32,96], index: 1, kind: input, shape index: {}]   ;;  %s1879_s2 = inlined_call_operand.vmem [shape: f32[1,96], index: 2, kind: input, shape index: {}]   ;;  %s1880_s3 = inlined_call_operand.vmem [shape: bf16[32,32], index: 3, kind: input, shape index: {}]   ;;  %s1881_s4 = inlined_call_operand.vmem [shape: bf16[32,128], index: 4, kind: input, shape index: {}]   ;;  %s1882_s5 = inlined_call_operand.vmem [shape: f32[1,128], index: 5, kind: input, shape index: {}]   ;;  %s1883_s6 = inlined_call_operand.vmem [shape: bf16[128,32], index: 6, kind: input, shape index: {}]   ;;  %s1884_s7 = inlined_call_operand.vmem [shape: f32[6,32], index: 7, kind: input, shape index: {}]   ;;  %s1885_s8 = inlined_call_operand.hbm [shape: f32[2,8,32], index: 8, kind: output, shape index: {}]  }
   0x1   :  { %15 = vsyncpa [#allocation4 + $0x1], 0  ;;  %s1609_s27 = smov 0   ;;  %s1611_s28 = smov 0  }
   0x2   :  { %s1613_s29 = smov 0   ;;  %s1615_s30 = smov 0  }
   0x3 LB: > { %s1630_s9 = sadd.s32 4294967295, %s1545_s30   ;;  %s1217_s10 = sadd.s32 4294967294, %s1545_s30   ;;  %s1545_s30 = sphi %s1615_s30, %s1891_s30   ;;  %s1541_s29 = sphi %s1613_s29, %s1890_s29   ;;  %s1537_s28 = sphi %s1611_s28, %s1889_s28   ;;  %s1533_s27 = sphi %s1609_s27, %s1888_s27  }
   0x4   : > { %s1634_s11 = sadd.s32 1, %s1545_s30   ;;  %s201_s12 = sadd.s32 1, %s1541_s29 }
   0x5   : > { %s198_s13 = ssub.s32 %s1545_s30, %s1634_s11  ;;  %p211_p0 = scmp.ne.s32.totalorder %s1541_s29, %s1537_s28 }
   0x6   : > { %p199_p1 = scmp.eq.s32.totalorder %s198_s13, 0  ;;  %p212_p2 = scmp.eq.s32.totalorder %s1630_s9, 1 }
   0x7   : > { %p217_p3 = scmp.ne.s32.totalorder %s1537_s28, %s1533_s27  ;;  %p218_p4 = scmp.eq.s32.totalorder %s1217_s10, 1 }
   0x8   : > { %s1645_s14 = scalar_select %p199_p1, %s1541_s29, %s201_s12  }
   0x9   : > { %p1647_p5 = por %p212_p2, %p211_p0  ;;  %p1651_p6 = por %p218_p4, %p217_p3 }
   0xa   : > { %p1220_p7 = scmp.ge.s32.totalorder %s1545_s30, 1  ;;  %p264_p8 = scmp.lt.s32.totalorder %s1545_s30, 3 }
   0xc   : > { %p265_p9 = pnand %p1220_p7, %p264_p8 }
   0xd   : > { %p297_p10 = scmp.lt.s32.totalorder (!%p265_p9), %s1630_s9, 1  ;;  %vm309_vm0 = vcmask (!%p265_p9), 261120   ;;  %v1447_v7 = vld [vmem:[%s1878_s1] sm:$0xff] (!%p265_p9)   ;;  %v1547_v8 = vmov (!%p265_p9), 0.0   ;;  %vm1548_vm1 = vmmov (!%p265_p9), 0   ;;  %v1448_v9 = vld [vmem:[%s1878_s1 + $0x8] sm:$0xff] (!%p265_p9)  }
   0xe   : > { %268 = sbr.rel (%p265_p9) target bundleno = 2600 (0xa28), region = 52  ;;  %1300 = vmatprep.subr.bf16.mxu0 (!%p265_p9), %v1547_v8  ;;  %1304 = vmatprep.mubr.msk.bf16.mxu0 (!%p265_p9), %vm1548_vm1, %v1547_v8  ;;  %v1223_v14 = vld [vmem:[%s1884_s7] ss:$0 sm:$0xff] (!%p265_p9)  ;;  %v1224_v16 = vld [vmem:[%s1884_s7 + $0x1] ss:$0 sm:$0xff] (!%p265_p9)  ;;  %s1549_s19 = smov (!%p265_p9), 120  }
   0xf   : > { %1301 = vmatpush3.bf16.msra.mxu0 (!%p265_p9), %v1447_v7  ;;  %1320 = vmatprep.subr.bf16.mxu1 (!%p265_p9), %v1547_v8  ;;  %v1225_v20 = vld [vmem:[%s1879_s2] ss:$0 sm:$0xff] (!%p265_p9)  ;;  %s1550_s20 = smov (!%p265_p9), 96   ;;  %s1552_s22 = smov (!%p265_p9), 80   ;;  %vm405_vm2 = vcmask (!%p265_p9), 64512   ;;  %vm469_vm3 = vcmask (!%p265_p9), 1043456  }
  0x10   : > { %1302 = vmatprep.subr.bf16.mxu0 (!%p265_p9), %v1547_v8  ;;  %1322 = vmatprep.mubr.msk.bf16.mxu1 (!%p265_p9), %vm1548_vm1, %v1547_v8  ;;  %s1553_s23 = smov (!%p265_p9), 112   ;;  %s1554_s24 = smov (!%p265_p9), 72   ;;  %vm514_vm4 = vcmask (!%p265_p9), 60416   ;;  %vm633_vm5 = vcmask (!%p265_p9), 126016   ;;  %vm752_vm6 = vcmask (!%p265_p9), 191616   ;;  %vm871_vm7 = vcmask (!%p265_p9), 257216  }
  0x11   : > { %s1555_s25 = smov (!%p265_p9), 104   ;;  %s1556_s26 = smov (!%p265_p9), 64  }
  0x12   : > { %s1557_s10 = smov (!%p265_p9), 56   ;;  %s1558_s12 = smov (!%p265_p9), 48  }
  0x13   : > { %1303 = vmatpush3.bf16.msra.mxu0 (!%p265_p9), %v1448_v9  ;;  %s1559_s13 = smov (!%p265_p9), 40  }
  0x14   : > { %1308 = vmatprep.subr.bf16.mxu0 (!%p265_p9), %v1547_v8 }
  0x15   : > { %s298_s17 = scalar_select %p297_p10, %s1630_s9, 1 }
  0x17   : > { %s1222_s18 = sshll.u32 %s298_s17, 3  ;;  %s1560_s17 = smov 8  }
  0x18   : > { %s300_s21 = scalar_lea.vmem %s1877_s0, %s1222_s18 }
  0x19   : > { %v1662_v0 = vld [vmem:[%s300_s21] sm:$0xff]  ;;  %s1551_s21 = smov 88  }
  0x1a   : > { %v310_v1 = vsel %vm309_vm0, %v1662_v0, 0.0 }
  0x1b   : > { %311 = vadd.xlane.f32.xlu0 %v310_v1 }
  0xa8   : > { %v312_v2 = vpop.xlane.xlu0 %311 }
  0xa9   : > { %v314_v3 = vmul.f32 0.03125, %v312_v2 }
  0xab   : > { %v315_v4 = vsub.f32 %v1662_v0, %v314_v3 }
  0xad   : > { %v316_v5 = vmul.f32 %v315_v4, %v315_v4 }
  0xaf   : > { %v317_v6 = vsel %vm309_vm0, %v316_v5, 0.0 }
  0xb0   : > { %318 = vadd.xlane.f32.xlu0 %v317_v6 }
 0x13d   : > { %v319_v10 = vpop.xlane.xlu0 %318 }
 0x13e   : > { %v320_v11 = vmul.f32 0.03125, %v319_v10 }
 0x140   : > { %v321_v12 = vadd.f32 1e-05, %v320_v11 }
 0x142   : > { %1461 = vrsqrt.f32 %v321_v12 }
 0x14c   : > { %v1462_v13 = vpop.eup %1461 }
 0x14d   : > { %v323_v15 = vmul.f32 %v1462_v13, %v315_v4 }
 0x14f   : > { %v328_v17 = vmul.f32 %v1223_v14, %v323_v15 }
 0x151   : > { %v333_v18 = vadd.f32 %v1224_v16, %v328_v17 }
 0x153   : > { %v334_v19 = vpack.c.bf16 %v333_v18, %v333_v18 }
 0x155   : > { %1305 = vmatmul.mubr.msk.bf16.vlgmr.msra.gmra.mrb[0].mxu0 %vm309_vm0, %v334_v19 }
 0x156   : > { %1310 = vmatprep.mubr.msk.bf16.mxu0 %vm1548_vm1, %v1547_v8 }
 0x228   : > { %v395_v21 = vpop.f32.mrb[0].mxu0 }
 0x229   : > { %v396_v22 = vadd.f32 %v1225_v20, %v395_v21  ;;  %v1306_v23 = vpop.f32.mrb[1].mxu0 }
 0x22a   : > { %v398_v24 = vpop.f32.mrb[2].mxu0 }
 0x22b   : > { %v1694_v25 = vpack.c.bf16 %v396_v22, %v396_v22  ;;  %v1307_v26 = vpop.f32.mrb[3].mxu0 }
 0x22d   : > { %516 = vrot.lane.b32.xlu0 %v1694_v25, %s1549_s19  ;;  %403 = vrot.lane.b32.xlu1 %v1694_v25, %s1550_s20 }
 0x231   : > { %518 = vrot.lane.b32.xlu1 %v1694_v25, %s1551_s21 }
 0x235   : > { %637 = vrot.lane.b32.xlu1 %v1694_v25, %s1552_s22  ;;  %s1561_s22 = smov 16  }
 0x239   : > { %635 = vrot.lane.b32.xlu1 %v1694_v25, %s1553_s23  ;;  %s1562_s23 = smov 24  }
 0x23d   : > { %756 = vrot.lane.b32.xlu1 %v1694_v25, %s1554_s24  ;;  %s1563_s24 = smov [#allocation3]  }
 0x241   : > { %754 = vrot.lane.b32.xlu1 %v1694_v25, %s1555_s25  ;;  %s1487_s25 = sshll.u32 %s1563_s24, 4  ;;  %s1488_s25 = int_to_ptr.vmem [resolvable:$false] %s1487_s25 }
 0x29f   : > { %v404_v27 = vpop.permute.xlu1 %403  ;;  %v517_v32 = vpop.permute.xlu0 %516 }
 0x2a0   : > { %v410_v28 = vsel %vm405_vm2, %v404_v27, 0 }
 0x2a1   : > { %1309 = vmatpush3.bf16.xpose.msra.mxu0 %v410_v28 }
 0x2a2   : > { %1314 = vmatprep.subr.bf16.mxu0 %v1547_v8 }
 0x2a3   : > { %v519_v29 = vpop.permute.xlu1 %518 }
 0x2a4   : > { %v524_v30 = vsel %vm405_vm2, %v519_v29, 0 }
 0x2a5   : > { %1321 = vmatpush3.bf16.xpose.msra.mxu1 %v524_v30 }
 0x2a6   : > { %1332 = vmatprep.subr.bf16.mxu1 %v1547_v8 }
 0x2a7   : > { %v638_v31 = vpop.permute.xlu1 %637 }
 0x2a8   : > { %1311 = vmatmul.mubr.msk.bf16.vlgmr.msra.gmra.mrb[4].mxu0 %vm405_vm2, %v1694_v25  ;;  %v643_v34 = vsel %vm405_vm2, %v638_v31, 0 }
 0x2a9   : > { %1316 = vmatprep.mubr.msk.bf16.mxu0 %vm1548_vm1, %v1547_v8 }
 0x2ab   : > { %v636_v33 = vpop.permute.xlu1 %635 }
 0x2ac   : > { %1323 = vmatmul.mubr.msk.bf16.vlgmr.msra.gmra.mrb[0].mxu1 %vm405_vm2, %v517_v32 }
 0x2ad   : > { %1333 = vmatpush3.bf16.xpose.msra.mxu1 %v643_v34  ;;  %1334 = vmatprep.mubr.msk.bf16.mxu1 %vm1548_vm1, %v1547_v8 }
 0x2ae   : > { %1344 = vmatprep.subr.bf16.mxu1 %v1547_v8 }
 0x2af   : > { %v757_v35 = vpop.permute.xlu1 %756 }
 0x2b0   : > { %v762_v36 = vsel %vm405_vm2, %v757_v35, 0 }
 0x2b3   : > { %v755_v37 = vpop.permute.xlu1 %754 }
 0x2b4   : > { %1335 = vmatmul.mubr.msk.bf16.vlgmr.msra.gmra.mrb[4].mxu1 %vm405_vm2, %v636_v33 }
 0x2b5   : > { %1345 = vmatpush3.bf16.xpose.msra.mxu1 %v762_v36  ;;  %1346 = vmatprep.mubr.msk.bf16.mxu1 %vm1548_vm1, %v1547_v8 }
 0x2b6   : > { %1356 = vmatprep.subr.bf16.mxu1 %v1547_v8 }
 0x2bc   : > { %1347 = vmatmul.mubr.msk.bf16.vlgmr.msra.gmra.mrb[8].mxu1 %vm405_vm2, %v755_v37 }
 0x2bd   : > { %1360 = vmatprep.mubr.msk.bf16.mxu1 %vm1548_vm1, %v1547_v8 }
 0x37b   : > { %v446_v38 = vpop.f32.mrb[4].mxu0 }
 0x37c   : > { %v1312_v39 = vpop.f32.mrb[5].mxu0  ;;  %v452_v40 = vsel %vm405_vm2, %v446_v38, -inf }
 0x37d   : > { %453 = vmax.xlane.f32.xlu1 %v452_v40  ;;  %v449_v41 = vpop.f32.mrb[6].mxu0 }
 0x37e   : > { %v1313_v42 = vpop.f32.mrb[7].mxu0 }
 0x37f   : > { %v560_v43 = vpop.f32.mrb[0].mxu1 }
 0x380   : > { %v1324_v44 = vpop.f32.mrb[1].mxu1  ;;  %v566_v45 = vsel %vm405_vm2, %v560_v43, -inf }
 0x381   : > { %567 = vmax.xlane.f32.xlu0 %v566_v45  ;;  %v563_v46 = vpop.f32.mrb[2].mxu1 }
 0x382   : > { %v1325_v47 = vpop.f32.mrb[3].mxu1 }
 0x387   : > { %v679_v48 = vpop.f32.mrb[4].mxu1 }
 0x388   : > { %v1336_v49 = vpop.f32.mrb[5].mxu1  ;;  %v685_v50 = vsel %vm405_vm2, %v679_v48, -inf }
 0x389   : > { %v682_v51 = vpop.f32.mrb[6].mxu1  ;;  %686 = vmax.xlane.f32.xlu1 %v685_v50  ;;  %v1449_v50 = vld [vmem:[%s1880_s3] sm:$0xff]  }
 0x38a   : > { %v1337_v52 = vpop.f32.mrb[7].mxu1  ;;  %1357 = vmatpush3.bf16.msra.mxu1 %v1449_v50 }
 0x38b   : > { %v1450_v52 = vld [vmem:[%s1880_s3 + $0x8] sm:$0xff]   ;;  %1358 = vmatprep.subr.bf16.mxu1 %v1547_v8 }
 0x38e   : > { %1359 = vmatpush3.bf16.msra.mxu1 %v1450_v52 }
 0x38f   : > { %v798_v53 = vpop.f32.mrb[8].mxu1  ;;  %1372 = vmatprep.subr.bf16.mxu1 %v1547_v8 }
 0x390   : > { %v1348_v54 = vpop.f32.mrb[9].mxu1  ;;  %v804_v55 = vsel %vm405_vm2, %v798_v53, -inf }
 0x391   : > { %805 = vmax.xlane.f32.xlu0 %v804_v55  ;;  %v801_v56 = vpop.f32.mrb[10].mxu1 }
 0x392   : > { %v1349_v57 = vpop.f32.mrb[11].mxu1 }
 0x40a   : > { %v454_v58 = vpop.xlane.xlu1 %453 }
 0x40b   : > { %v455_v59 = vsub.f32 %v446_v38, %v454_v58 }
 0x40d   : > { %v456_v60 = vmul.f32 1.442695, %v455_v59 }
 0x40e   : > { %v568_v61 = vpop.xlane.xlu0 %567 }
 0x40f   : > { %1463 = vpow2.f32 %v456_v60  ;;  %v569_v62 = vsub.f32 %v560_v43, %v568_v61 }
 0x411   : > { %v570_v63 = vmul.f32 1.442695, %v569_v62 }
 0x413   : > { %1465 = vpow2.f32 %v570_v63 }
 0x416   : > { %v687_v11 = vpop.xlane.xlu1 %686 }
 0x417   : > { %v688_v12 = vsub.f32 %v679_v48, %v687_v11 }
 0x419   : > { %v1464_v1 = vpop.eup %1463  ;;  %v689_v13 = vmul.f32 1.442695, %v688_v12 }
 0x41a   : > { %v458_v2 = vsel %vm405_vm2, %v1464_v1, 0.0 }
 0x41b   : > { %459 = vadd.xlane.f32.xlu1 %v458_v2 }
 0x41d   : > { %v1466_v3 = vpop.eup %1465 }
 0x41e   : > { %v806_v4 = vpop.xlane.xlu0 %805  ;;  %v572_v5 = vsel %vm405_vm2, %v1466_v3, 0.0 }
 0x41f   : > { %v807_v6 = vsub.f32 %v798_v53, %v806_v4  ;;  %573 = vadd.xlane.f32.xlu0 %v572_v5 }
 0x421   : > { %v808_v7 = vmul.f32 1.442695, %v807_v6 }
 0x423   : > { %1467 = vpow2.f32 %v808_v7 }
 0x424   : > { %1469 = vpow2.f32 %v689_v13 }
 0x42c   : > { %464 = vrot.lane.b32.xlu1 %v1694_v25, %s1556_s26  ;;  %s294_s26 = sand.u32 1, %s1537_s28  }
 0x42d   : > { %v1468_v9 = vpop.eup %1467 }
 0x42e   : > { %v810_v10 = vsel %vm405_vm2, %v1468_v9, 0.0  ;;  %v1470_v14 = vpop.eup %1469 }
 0x42f   : > { %811 = vadd.xlane.f32.xlu0 %v810_v10  ;;  %v691_v15 = vsel %vm405_vm2, %v1470_v14, 0.0 }
 0x445   : > { %578 = vrot.lane.b32.xlu0 %v1694_v25, %s1557_s10  ;;  %s1221_s10 = sshll.u32 %s294_s26, 3 }
 0x446   : > { %s296_s18 = scalar_lea.vmem [#allocation3], %s1221_s10  ;;  %s1489_s10 = scalar_lea.vmem %s1488_s25, 256 }
 0x447   : > { %s1158_s19 = sshll.u32 %s296_s18, 4  ;;  %s1836_s19 = int_to_ptr.vmem [resolvable:$true] %s1158_s19 }
 0x448   : > { %p1490_p0 = scmp.lt.s32.totalorder %s1836_s19, %s1488_s25 }
 0x450   : > { %692 = vadd.xlane.f32.xlu1 %v691_v15 }
 0x461   : > { %697 = vrot.lane.b32.xlu1 %v1694_v25, %s1558_s12 }
 0x465   : > { %816 = vrot.lane.b32.xlu1 %v1694_v25, %s1559_s13 }
 0x4a8   : > { %v460_v16 = vpop.xlane.xlu1 %459 }
 0x4a9   : > { %1471 = vrcp.f32 %v460_v16 }
 0x4ac   : > { %v465_v17 = vpop.permute.xlu1 %464  ;;  %v574_v19 = vpop.xlane.xlu0 %573 }
 0x4ad   : > { %v471_v18 = vsel %vm469_vm3, %v465_v17, 0  ;;  %1473 = vrcp.f32 %v574_v19  ;;  %v1451_v17 = vld [vmem:[%s1881_s4] sm:$0xff]   ;;  %v1454_v19 = vld [vmem:[%s1883_s6 + $0x8] sm:$0xff]  }
 0x4ae   : > { %1315 = vmatpush3.bf16.msra.mxu0 %v471_v18  ;;  %v1453_v18 = vld [vmem:[%s1883_s6] sm:$0xff]  }
 0x4af   : > { %1326 = vmatprep.subr.bf16.mxu0 %v1547_v8 }
 0x4b3   : > { %v1472_v20 = vpop.eup %1471 }
 0x4b4   : > { %v462_v21 = vmul.f32 %v1472_v20, %v1464_v1  ;;  %v1455_v20 = vld [vmem:[%s1883_s6 + $0x10] sm:$0xff]  }
 0x4b6   : > { %v463_v22 = vpack.c.bf16 %v462_v21, %v462_v21 }
 0x4b7   : > { %v1474_v23 = vpop.eup %1473 }
 0x4b8   : > { %1317 = vmatmul.mubr.msk.bf16.vlgmr.msra.gmra.mrb[8].mxu0 %vm405_vm2, %v463_v22  ;;  %v576_v25 = vmul.f32 %v1474_v23, %v1466_v3  ;;  %v1240_v3 = vld [vmem:[%s1884_s7 + $0x4] ss:$0 sm:$0xff] }
 0x4b9   : > { %1328 = vmatprep.mubr.msk.bf16.mxu0 %vm1548_vm1, %v1547_v8 }
 0x4ba   : > { %v577_v28 = vpack.c.bf16 %v576_v25, %v576_v25  ;;  %v1244_v25 = vld [vmem:[%s1884_s7 + $0x2] ss:$0 sm:$0xff] }
 0x4bc   : > { %v812_v24 = vpop.xlane.xlu0 %811 }
 0x4c0   : > { %v579_v26 = vpop.permute.xlu0 %578 }
 0x4c1   : > { %v584_v27 = vsel %vm469_vm3, %v579_v26, 0 }
 0x4c2   : > { %1327 = vmatpush3.bf16.msra.mxu0 %v584_v27  ;;  %v1245_v27 = vld [vmem:[%s1884_s7 + $0x3] ss:$0 sm:$0xff] }
 0x4c3   : > { %1338 = vmatprep.subr.bf16.mxu0 %v1547_v8 }
 0x4c5   : > { %1329 = vmatmul.mubr.msk.bf16.vlgmr.msra.gmra.mrb[12].mxu0 %vm405_vm2, %v577_v28 }
 0x4c6   : > { %1340 = vmatprep.mubr.msk.bf16.mxu0 %vm1548_vm1, %v1547_v8 }
 0x4dd   : > { %v693_v29 = vpop.xlane.xlu1 %692 }
 0x4de   : > { %1475 = vrcp.f32 %v693_v29 }
 0x4df   : > { %1477 = vrcp.f32 %v812_v24 }
 0x4e1   : > { %v698_v30 = vpop.permute.xlu1 %697 }
 0x4e2   : > { %v703_v31 = vsel %vm469_vm3, %v698_v30, 0 }
 0x4e3   : > { %1339 = vmatpush3.bf16.msra.mxu0 %v703_v31  ;;  %v1456_v31 = vld [vmem:[%s1883_s6 + $0x18] sm:$0xff]  }
 0x4e4   : > { %1350 = vmatprep.subr.bf16.mxu0 %v1547_v8 }
 0x4e5   : > { %v817_v34 = vpop.permute.xlu1 %816 }
 0x4e6   : > { %v822_v37 = vsel %vm469_vm3, %v817_v34, 0  ;;  %v1459_v34 = vld [vmem:[%s1883_s6 + $0x30] sm:$0xff]  }
 0x4e8   : > { %v1476_v32 = vpop.eup %1475 }
 0x4e9   : > { %v695_v33 = vmul.f32 %v1476_v32, %v1470_v14  ;;  %v1478_v36 = vpop.eup %1477  ;;  %v1457_v32 = vld [vmem:[%s1883_s6 + $0x20] sm:$0xff]  }
 0x4ea   : > { %v814_v38 = vmul.f32 %v1478_v36, %v1468_v9  ;;  %v1246_v36 = vld [vmem:[%s1882_s5] ss:$0 sm:$0xff] }
 0x4eb   : > { %v696_v35 = vpack.c.bf16 %v695_v33, %v695_v33  ;;  %v1458_v33 = vld [vmem:[%s1883_s6 + $0x28] sm:$0xff]  }
 0x4ec   : > { %v815_v39 = vpack.c.bf16 %v814_v38, %v814_v38 }
 0x4ed   : > { %1341 = vmatmul.mubr.msk.bf16.vlgmr.msra.gmra.mrb[16].mxu0 %vm405_vm2, %v696_v35  ;;  %v1460_v35 = vld [vmem:[%s1883_s6 + $0x38] sm:$0xff]  }
 0x4ee   : > { %1351 = vmatpush3.bf16.msra.mxu0 %v822_v37  ;;  %1352 = vmatprep.mubr.msk.bf16.mxu0 %vm1548_vm1, %v1547_v8 }
 0x4ef   : > { %1364 = vmatprep.subr.bf16.mxu0 %v1547_v8 }
 0x4f5   : > { %1353 = vmatmul.mubr.msk.bf16.vlgmr.msra.gmra.mrb[20].mxu0 %vm405_vm2, %v815_v39 }
 0x4f6   : > { %1368 = vmatprep.mubr.msk.bf16.mxu0 %vm1548_vm1, %v1547_v8  ;;  %1365 = vmatpush3.bf16.msra.mxu0 %v1451_v17 }
 0x4f7   : > { %1366 = vmatprep.subr.bf16.mxu0 %v1547_v8 }
 0x58b   : > { %v507_v40 = vpop.f32.mrb[8].mxu0 }
 0x58c   : > { %v513_v41 = vpack.c.bf16 %v507_v40, %v507_v40  ;;  %v1318_v42 = vpop.f32.mrb[9].mxu0 }
 0x58d   : > { %v510_v43 = vpop.f32.mrb[10].mxu0 }
 0x58e   : > { %515 = vst.msk [vmem:[#allocation2] sm:$0xf] %vm514_vm4, %v513_v41  ;;  %v1319_v44 = vpop.f32.mrb[11].mxu0 }
 0x598   : > { %v620_v45 = vpop.f32.mrb[12].mxu0 }
 0x599   : > { %v1263_v46 = vpack.c.bf16 %v620_v45, %v620_v45  ;;  %v1330_v47 = vpop.f32.mrb[13].mxu0 }
 0x59a   : > { %v623_v48 = vpop.f32.mrb[14].mxu0  ;;  %v1250_v47 = vld [vmem:[%s1884_s7 + $0x5] ss:$0 sm:$0xff] }
 0x59b   : > { %630 = vrot.lane.b32.xlu0 %v1263_v46, %s1560_s17  ;;  %v1331_v49 = vpop.f32.mrb[15].mxu0  ;;  %s1260_s17 = sshll.u32 %s1630_s9, 7  ;;  %s1145_s9 = scalar_lea.sflag [#allocation4], %s294_s26 }
 0x5c0   : > { %v739_v51 = vpop.f32.mrb[16].mxu0 }
 0x5c1   : > { %v1264_v53 = vpack.c.bf16 %v739_v51, %v739_v51  ;;  %v1342_v54 = vpop.f32.mrb[17].mxu0 }
 0x5c2   : > { %v742_v55 = vpop.f32.mrb[18].mxu0 }
 0x5c3   : > { %749 = vrot.lane.b32.xlu1 %v1264_v53, %s1561_s22  ;;  %v1343_v56 = vpop.f32.mrb[19].mxu0  ;;  %s1834_s22 = scalar_lea.hbm %s1885_s8, %s1260_s17 }
 0x5c8   : > { %v858_v57 = vpop.f32.mrb[20].mxu0 }
 0x5c9   : > { %v1265_v58 = vpack.c.bf16 %v858_v57, %v858_v57  ;;  %v1354_v59 = vpop.f32.mrb[21].mxu0 }
 0x5ca   : > { %v861_v60 = vpop.f32.mrb[22].mxu0 }
 0x5cb   : > { %868 = vrot.lane.b32.xlu0 %v1265_v58, %s1562_s23  ;;  %v1355_v61 = vpop.f32.mrb[23].mxu0  ;;  %s1483_s23 = scalar_lea.vmem %s1836_s19, 128 }
 0x5cc   : > { %p1484_p11 = scmp.ne.s32.totalorder %s1836_s19, %s1483_s23  ;;  %p1491_p1 = scmp.lt.s32.totalorder %s1489_s10, %s1483_s23 }
 0x5ce   : > { %p1485_p12 = pnand %p1484_p11, %p1647_p5  ;;  %p1492_p2 = por %p1491_p1, %p1490_p0 }
 0x5d0   : > { %p1486_p13 = pneg %p1485_p12 }
 0x5d2   : > { %p1493_p3 = pnand %p1492_p2, %p1486_p13 }
 0x60d   : > { %v631_v62 = vpop.permute.xlu0 %630 }
 0x60e   : > { %634 = vst.msk [vmem:[#allocation2] sm:$0xf] %vm633_vm5, %v631_v62 }
 0x635   : > { %v750_v63 = vpop.permute.xlu1 %749 }
 0x636   : > { %753 = vst.msk [vmem:[#allocation2] sm:$0xf] %vm752_vm6, %v750_v63 }
 0x63d   : > { %v869_v1 = vpop.permute.xlu0 %868 }
 0x63e   : > { %872 = vst.msk [vmem:[#allocation2] sm:$0xf] %vm871_vm7, %v869_v1 }
 0x645   : > { %v873_v2 = vld [vmem:[#allocation2] sm:$0xf] }
 0x646   : > { %1361 = vmatmul.mubr.msk.bf16.vlgmr.msra.gmra.mrb[12].mxu1 %vm309_vm0, %v873_v2 }
 0x647   : > { %1388 = vmatprep.mubr.msk.bf16.mxu1 %vm1548_vm1, %v1547_v8  ;;  %1373 = vmatpush3.bf16.msra.mxu1 %v1453_v18 }
 0x648   : > { %1374 = vmatprep.subr.bf16.mxu1 %v1547_v8 }
 0x64b   : > { %1375 = vmatpush3.bf16.msra.mxu1 %v1454_v19 }
 0x64c   : > { %1376 = vmatprep.subr.bf16.mxu1 %v1547_v8 }
 0x64f   : > { %1377 = vmatpush3.bf16.msra.mxu1 %v1455_v20 }
 0x650   : > { %1378 = vmatprep.subr.bf16.mxu1 %v1547_v8 }
 0x653   : > { %1379 = vmatpush3.bf16.msra.mxu1 %v1456_v31 }
 0x654   : > { %1380 = vmatprep.subr.bf16.mxu1 %v1547_v8 }
 0x657   : > { %1381 = vmatpush3.bf16.msra.mxu1 %v1457_v32 }
 0x658   : > { %1382 = vmatprep.subr.bf16.mxu1 %v1547_v8 }
 0x65b   : > { %1383 = vmatpush3.bf16.msra.mxu1 %v1458_v33 }
 0x65c   : > { %1384 = vmatprep.subr.bf16.mxu1 %v1547_v8 }
 0x65f   : > { %1385 = vmatpush3.bf16.msra.mxu1 %v1459_v34 }
 0x660   : > { %1386 = vmatprep.subr.bf16.mxu1 %v1547_v8 }
 0x663   : > { %1387 = vmatpush3.bf16.msra.mxu1 %v1460_v35 }
 0x719   : > { %v931_v4 = vpop.f32.mrb[12].mxu1 }
 0x71a   : > { %v932_v5 = vadd.f32 %v1240_v3, %v931_v4  ;;  %v1362_v6 = vpop.f32.mrb[13].mxu1 }
 0x71b   : > { %v934_v7 = vpop.f32.mrb[14].mxu1 }
 0x71c   : > { %v1771_v9 = vadd.f32 %v932_v5, %v1662_v0  ;;  %v1363_v10 = vpop.f32.mrb[15].mxu1  ;;  %v1452_v0 = vld [vmem:[%s1881_s4 + $0x8] sm:$0xff]  }
 0x71d   : > { %1367 = vmatpush3.bf16.msra.mxu0 %v1452_v0 }
 0x71e   : > { %v938_v11 = vsel %vm309_vm0, %v1771_v9, 0.0 }
 0x71f   : > { %939 = vadd.xlane.f32.xlu1 %v938_v11 }
 0x7ac   : > { %v940_v12 = vpop.xlane.xlu1 %939 }
 0x7ad   : > { %v941_v13 = vmul.f32 0.03125, %v940_v12 }
 0x7af   : > { %v942_v14 = vsub.f32 %v1771_v9, %v941_v13 }
 0x7b1   : > { %v943_v15 = vmul.f32 %v942_v14, %v942_v14 }
 0x7b3   : > { %v944_v16 = vsel %vm309_vm0, %v943_v15, 0.0 }
 0x7b4   : > { %945 = vadd.xlane.f32.xlu0 %v944_v16 }
 0x841   : > { %v946_v21 = vpop.xlane.xlu0 %945 }
 0x842   : > { %v947_v22 = vmul.f32 0.03125, %v946_v21 }
 0x844   : > { %v948_v23 = vadd.f32 1e-05, %v947_v22 }
 0x846   : > { %1479 = vrsqrt.f32 %v948_v23 }
 0x850   : > { %v1480_v24 = vpop.eup %1479 }
 0x851   : > { %v950_v26 = vmul.f32 %v1480_v24, %v942_v14 }
 0x853   : > { %v955_v28 = vmul.f32 %v1244_v25, %v950_v26 }
 0x855   : > { %v960_v29 = vadd.f32 %v1245_v27, %v955_v28 }
 0x857   : > { %v961_v30 = vpack.c.bf16 %v960_v29, %v960_v29 }
 0x859   : > { %1369 = vmatmul.mubr.msk.bf16.vlgmr.msra.gmra.mrb[24].mxu0 %vm309_vm0, %v961_v30 }
 0x92c   : > { %v1022_v37 = vpop.f32.mrb[24].mxu0 }
 0x92d   : > { %v1023_v38 = vadd.f32 %v1246_v36, %v1022_v37  ;;  %v1370_v39 = vpop.f32.mrb[25].mxu0 }
 0x92e   : > { %v1025_v40 = vpop.f32.mrb[26].mxu0 }
 0x92f   : > { %v1029_v41 = vmul.f32 0.70710677, %v1023_v38  ;;  %v1371_v42 = vpop.f32.mrb[27].mxu0  ;;  %v1028_v8 = vmul.f32 0.5, %v1023_v38 }
 0x931   : > { %1481 = verf.f32 %v1029_v41 }
 0x93b   : > { %v1482_v43 = vpop.eup %1481 }
 0x93c   : > { %v1031_v44 = vadd.f32 1.0, %v1482_v43 }
 0x93e   : > { %v1032_v45 = vmul.f32 %v1031_v44, %v1028_v8 }
 0x940   : > { %v1033_v46 = vpack.c.bf16 %v1032_v45, %v1032_v45 }
 0x942   : > { %1389 = vmatmul.mubr.bf16.vlgmr.msra.gmra.mrb[16].mxu1 %v1033_v46 }
 0xa15   : > { %v1136_v48 = vpop.f32.mrb[16].mxu1 }
 0xa16   : > { %v1137_v49 = vadd.f32 %v1250_v47, %v1136_v48  ;;  %v1390_v50 = vpop.f32.mrb[17].mxu1 }
 0xa17   : > { %v1139_v51 = vpop.f32.mrb[18].mxu1 }
 0xa18   : > { %v1142_v52 = vadd.f32 %v1137_v49, %v1771_v9  ;;  %v1391_v53 = vpop.f32.mrb[19].mxu1 }
 0xa1a   : > { %1143 = vst.msk [vmem:[%s296_s18] sm:$0xff] %vm309_vm0, %v1142_v52 }
 0xa1b   : > { %1496 = shalt.err (!%p1493_p3)
}
 0xa1c   : > { %s1497_s26 = scalar_lea.hbm %s1834_s22, 128  ;;  %s1501_s17 = scalar_lea.hbm %s1885_s8, 256 }
 0xa1d   : > { %p1498_p4 = scmp.ne.s32.totalorder %s1834_s22, %s1497_s26  ;;  %p1502_p9 = scmp.lt.u32.totalorder %s1834_s22, %s1885_s8 }
 0xa1e   : > { %p1503_p10 = scmp.lt.u32.totalorder %s1501_s17, %s1497_s26  ;;  %p1505_p12 = scmp.lt.u32.totalorder %s1497_s26, %s1834_s22 }
 0xa1f   : > { %p1499_p7 = pnand %p1498_p4, %p1647_p5 }
 0xa20   : > { %p1504_p11 = por %p1503_p10, %p1502_p9 }
 0xa21   : > { %p1500_p8 = pneg %p1499_p7 }
 0xa22   : > { %p1506_p13 = por %p1505_p12, %p1504_p11 }
 0xa24   : > { %p1507_p0 = pnand %p1506_p13, %p1500_p8 }
 0xa26   : > { %1510 = shalt.err (!%p1507_p0)
}
 0xa27   : > { %1392 = dma.vmem_to_hbm [thread:$0]  (%p1647_p5), %s1836_s19, 128, %s1834_s22, %s1145_s9  }
 0xa28 PF: > { %p1398_p1 = scmp.ge.s32.totalorder %s1545_s30, 2  ;;  %s1170_s21 = sand.u32 1, %s1533_s27  }
 0xa29   : > { %s1171_s23 = scalar_lea.sflag [#allocation4], %s1170_s21 }
 0xa2a   : > { %p1395_p2 = pnand %p1398_p1, %p1651_p6 }
 0xa2c   : > { %1528 = dma.done.wait (!%p1395_p2), %s1171_s23, 128  }
 0xa2d   : > { %1530 = vsyncadd (!%p1395_p2), %s1171_s23, 4294967168  ;;  %p18_p3 = scmp.ge.s32.totalorder %s1634_s11, 4   ;;  %s1888_s27 = smov %s1537_s28 }
 0xa2e   : > { %s1889_s28 = smov %s1541_s29  ;;  %s1890_s29 = smov %s1645_s14 }
 0xa2f   : > { %s1891_s30 = smov %s1634_s11  ;;  %20 = sbr.rel (!%p18_p3) target bundleno = 3 (0x3), region = 87 }
 0xa36   :  { %1176 = vsyncpa [#allocation4], 1 }
 0xa37   :  { %1178 = vsyncpa [#allocation4 + $0x1], 1 }

// kernel: tpu_custom_call.1
= control target key start
LH: loop header
LB: loop body
LE: loop exit
PB: predicated region body
PF: predicated region fallthrough
CT: control target
= control target key end

     0   :  { %13 = vsyncpa [#allocation4], 0  ;;  %s1877_s0 = inlined_call_operand.vmem [shape: f32[2,8,32], index: 0, kind: input, shape index: {}]   ;;  %s1878_s1 = inlined_call_operand.vmem [shape: bf16[32,96], index: 1, kind: input, shape index: {}]   ;;  %s1879_s2 = inlined_call_operand.vmem [shape: f32[1,96], index: 2, kind: input, shape index: {}]   ;;  %s1880_s3 = inlined_call_operand.vmem [shape: bf16[32,32], index: 3, kind: input, shape index: {}]   ;;  %s1881_s4 = inlined_call_operand.vmem [shape: bf16[32,128], index: 4, kind: input, shape index: {}]   ;;  %s1882_s5 = inlined_call_operand.vmem [shape: f32[1,128], index: 5, kind: input, shape index: {}]   ;;  %s1883_s6 = inlined_call_operand.vmem [shape: bf16[128,32], index: 6, kind: input, shape index: {}]   ;;  %s1884_s7 = inlined_call_operand.vmem [shape: f32[6,32], index: 7, kind: input, shape index: {}]   ;;  %s1885_s8 = inlined_call_operand.hbm [shape: f32[2,8,32], index: 8, kind: output, shape index: {}]  }
   0x1   :  { %15 = vsyncpa [#allocation4 + $0x1], 0  ;;  %s1609_s27 = smov 0   ;;  %s1611_s28 = smov 0  }
   0x2   :  { %s1613_s29 = smov 0   ;;  %s1615_s30 = smov 0  }
   0x3 LB: > { %s1630_s9 = sadd.s32 4294967295, %s1545_s30   ;;  %s1217_s10 = sadd.s32 4294967294, %s1545_s30   ;;  %s1545_s30 = sphi %s1615_s30, %s1891_s30   ;;  %s1541_s29 = sphi %s1613_s29, %s1890_s29   ;;  %s1537_s28 = sphi %s1611_s28, %s1889_s28   ;;  %s1533_s27 = sphi %s1609_s27, %s1888_s27  }
   0x4   : > { %s1634_s11 = sadd.s32 1, %s1545_s30   ;;  %s201_s12 = sadd.s32 1, %s1541_s29 }
   0x5   : > { %s198_s13 = ssub.s32 %s1545_s30, %s1634_s11  ;;  %p211_p0 = scmp.ne.s32.totalorder %s1541_s29, %s1537_s28 }
   0x6   : > { %p199_p1 = scmp.eq.s32.totalorder %s198_s13, 0  ;;  %p212_p2 = scmp.eq.s32.totalorder %s1630_s9, 1 }
   0x7   : > { %p217_p3 = scmp.ne.s32.totalorder %s1537_s28, %s1533_s27  ;;  %p218_p4 = scmp.eq.s32.totalorder %s1217_s10, 1 }
   0x8   : > { %s1645_s14 = scalar_select %p199_p1, %s1541_s29, %s201_s12  }
   0x9   : > { %p1647_p5 = por %p212_p2, %p211_p0  ;;  %p1651_p6 = por %p218_p4, %p217_p3 }
   0xa   : > { %p1220_p7 = scmp.ge.s32.totalorder %s1545_s30, 1  ;;  %p264_p8 = scmp.lt.s32.totalorder %s1545_s30, 3 }
   0xc   : > { %p265_p9 = pnand %p1220_p7, %p264_p8 }
   0xd   : > { %p297_p10 = scmp.lt.s32.totalorder (!%p265_p9), %s1630_s9, 1  ;;  %vm309_vm0 = vcmask (!%p265_p9), 261120   ;;  %v1447_v7 = vld [vmem:[%s1878_s1] sm:$0xff] (!%p265_p9)   ;;  %v1547_v8 = vmov (!%p265_p9), 0.0   ;;  %vm1548_vm1 = vmmov (!%p265_p9), 0   ;;  %v1448_v9 = vld [vmem:[%s1878_s1 + $0x8] sm:$0xff] (!%p265_p9)  }
   0xe   : > { %268 = sbr.rel (%p265_p9) target bundleno = 2600 (0xa28), region = 52  ;;  %1300 = vmatprep.subr.bf16.mxu0 (!%p265_p9), %v1547_v8  ;;  %1304 = vmatprep.mubr.msk.bf16.mxu0 (!%p265_p9), %vm1548_vm1, %v1547_v8  ;;  %v1223_v14 = vld [vmem:[%s1884_s7] ss:$0 sm:$0xff] (!%p265_p9)  ;;  %v1224_v16 = vld [vmem:[%s1884_s7 + $0x1] ss:$0 sm:$0xff] (!%p265_p9)  ;;  %s1549_s19 = smov (!%p265_p9), 120  }
   0xf   : > { %1301 = vmatpush3.bf16.msra.mxu0 (!%p265_p9), %v1447_v7  ;;  %1320 = vmatprep.subr.bf16.mxu1 (!%p265_p9), %v1547_v8  ;;  %v1225_v20 = vld [vmem:[%s1879_s2] ss:$0 sm:$0xff] (!%p265_p9)  ;;  %s1550_s20 = smov (!%p265_p9), 96   ;;  %s1552_s22 = smov (!%p265_p9), 80   ;;  %vm405_vm2 = vcmask (!%p265_p9), 64512   ;;  %vm469_vm3 = vcmask (!%p265_p9), 1043456  }
  0x10   : > { %1302 = vmatprep.subr.bf16.mxu0 (!%p265_p9), %v1547_v8  ;;  %1322 = vmatprep.mubr.msk.bf16.mxu1 (!%p265_p9), %vm1548_vm1, %v1547_v8  ;;  %s1553_s23 = smov (!%p265_p9), 112   ;;  %s1554_s24 = smov (!%p265_p9), 72   ;;  %vm514_vm4 = vcmask (!%p265_p9), 60416   ;;  %vm633_vm5 = vcmask (!%p265_p9), 126016   ;;  %vm752_vm6 = vcmask (!%p265_p9), 191616   ;;  %vm871_vm7 = vcmask (!%p265_p9), 257216  }
  0x11   : > { %s1555_s25 = smov (!%p265_p9), 104   ;;  %s1556_s26 = smov (!%p265_p9), 64  }
  0x12   : > { %s1557_s10 = smov (!%p265_p9), 56   ;;  %s1558_s12 = smov (!%p265_p9), 48  }
  0x13   : > { %1303 = vmatpush3.bf16.msra.mxu0 (!%p265_p9), %v1448_v9  ;;  %s1559_s13 = smov (!%p265_p9), 40  }
  0x14   : > { %1308 = vmatprep.subr.bf16.mxu0 (!%p265_p9), %v1547_v8 }
  0x15   : > { %s298_s17 = scalar_select %p297_p10, %s1630_s9, 1 }
  0x17   : > { %s1222_s18 = sshll.u32 %s298_s17, 3  ;;  %s1560_s17 = smov 8  }
  0x18   : > { %s300_s21 = scalar_lea.vmem %s1877_s0, %s1222_s18 }
  0x19   : > { %v1662_v0 = vld [vmem:[%s300_s21] sm:$0xff]  ;;  %s1551_s21 = smov 88  }
  0x1a   : > { %v310_v1 = vsel %vm309_vm0, %v1662_v0, 0.0 }
  0x1b   : > { %311 = vadd.xlane.f32.xlu0 %v310_v1 }
  0xa8   : > { %v312_v2 = vpop.xlane.xlu0 %311 }
  0xa9   : > { %v314_v3 = vmul.f32 0.03125, %v312_v2 }
  0xab   : > { %v315_v4 = vsub.f32 %v1662_v0, %v314_v3 }
  0xad   : > { %v316_v5 = vmul.f32 %v315_v4, %v315_v4 }
  0xaf   : > { %v317_v6 = vsel %vm309_vm0, %v316_v5, 0.0 }
  0xb0   : > { %318 = vadd.xlane.f32.xlu0 %v317_v6 }
 0x13d   : > { %v319_v10 = vpop.xlane.xlu0 %318 }
 0x13e   : > { %v320_v11 = vmul.f32 0.03125, %v319_v10 }
 0x140   : > { %v321_v12 = vadd.f32 1e-05, %v320_v11 }
 0x142   : > { %1461 = vrsqrt.f32 %v321_v12 }
 0x14c   : > { %v1462_v13 = vpop.eup %1461 }
 0x14d   : > { %v323_v15 = vmul.f32 %v1462_v13, %v315_v4 }
 0x14f   : > { %v328_v17 = vmul.f32 %v1223_v14, %v323_v15 }
 0x151   : > { %v333_v18 = vadd.f32 %v1224_v16, %v328_v17 }
 0x153   : > { %v334_v19 = vpack.c.bf16 %v333_v18, %v333_v18 }
 0x155   : > { %1305 = vmatmul.mubr.msk.bf16.vlgmr.msra.gmra.mrb[0].mxu0 %vm309_vm0, %v334_v19 }
 0x156   : > { %1310 = vmatprep.mubr.msk.bf16.mxu0 %vm1548_vm1, %v1547_v8 }
 0x228   : > { %v395_v21 = vpop.f32.mrb[0].mxu0 }
 0x229   : > { %v396_v22 = vadd.f32 %v1225_v20, %v395_v21  ;;  %v1306_v23 = vpop.f32.mrb[1].mxu0 }
 0x22a   : > { %v398_v24 = vpop.f32.mrb[2].mxu0 }
 0x22b   : > { %v1694_v25 = vpack.c.bf16 %v396_v22, %v396_v22  ;;  %v1307_v26 = vpop.f32.mrb[3].mxu0 }
 0x22d   : > { %516 = vrot.lane.b32.xlu0 %v1694_v25, %s1549_s19  ;;  %403 = vrot.lane.b32.xlu1 %v1694_v25, %s1550_s20 }
 0x231   : > { %518 = vrot.lane.b32.xlu1 %v1694_v25, %s1551_s21 }
 0x235   : > { %637 = vrot.lane.b32.xlu1 %v1694_v25, %s1552_s22  ;;  %s1561_s22 = smov 16  }
 0x239   : > { %635 = vrot.lane.b32.xlu1 %v1694_v25, %s1553_s23  ;;  %s1562_s23 = smov 24  }
 0x23d   : > { %756 = vrot.lane.b32.xlu1 %v1694_v25, %s1554_s24  ;;  %s1563_s24 = smov [#allocation3]  }
 0x241   : > { %754 = vrot.lane.b32.xlu1 %v1694_v25, %s1555_s25  ;;  %s1487_s25 = sshll.u32 %s1563_s24, 4  ;;  %s1488_s25 = int_to_ptr.vmem [resolvable:$false] %s1487_s25 }
 0x29f   : > { %v404_v27 = vpop.permute.xlu1 %403  ;;  %v517_v32 = vpop.permute.xlu0 %516 }
 0x2a0   : > { %v410_v28 = vsel %vm405_vm2, %v404_v27, 0 }
 0x2a1   : > { %1309 = vmatpush3.bf16.xpose.msra.mxu0 %v410_v28 }
 0x2a2   : > { %1314 = vmatprep.subr.bf16.mxu0 %v1547_v8 }
 0x2a3   : > { %v519_v29 = vpop.permute.xlu1 %518 }
 0x2a4   : > { %v524_v30 = vsel %vm405_vm2, %v519_v29, 0 }
 0x2a5   : > { %1321 = vmatpush3.bf16.xpose.msra.mxu1 %v524_v30 }
 0x2a6   : > { %1332 = vmatprep.subr.bf16.mxu1 %v1547_v8 }
 0x2a7   : > { %v638_v31 = vpop.permute.xlu1 %637 }
 0x2a8   : > { %1311 = vmatmul.mubr.msk.bf16.vlgmr.msra.gmra.mrb[4].mxu0 %vm405_vm2, %v1694_v25  ;;  %v643_v34 = vsel %vm405_vm2, %v638_v31, 0 }
 0x2a9   : > { %1316 = vmatprep.mubr.msk.bf16.mxu0 %vm1548_vm1, %v1547_v8 }
 0x2ab   : > { %v636_v33 = vpop.permute.xlu1 %635 }
 0x2ac   : > { %1323 = vmatmul.mubr.msk.bf16.vlgmr.msra.gmra.mrb[0].mxu1 %vm405_vm2, %v517_v32 }
 0x2ad   : > { %1333 = vmatpush3.bf16.xpose.msra.mxu1 %v643_v34  ;;  %1334 = vmatprep.mubr.msk.bf16.mxu1 %vm1548_vm1, %v1547_v8 }
 0x2ae   : > { %1344 = vmatprep.subr.bf16.mxu1 %v1547_v8 }
 0x2af   : > { %v757_v35 = vpop.permute.xlu1 %756 }
 0x2b0   : > { %v762_v36 = vsel %vm405_vm2, %v757_v35, 0 }
 0x2b3   : > { %v755_v37 = vpop.permute.xlu1 %754 }
 0x2b4   : > { %1335 = vmatmul.mubr.msk.bf16.vlgmr.msra.gmra.mrb[4].mxu1 %vm405_vm2, %v636_v33 }
 0x2b5   : > { %1345 = vmatpush3.bf16.xpose.msra.mxu1 %v762_v36  ;;  %1346 = vmatprep.mubr.msk.bf16.mxu1 %vm1548_vm1, %v1547_v8 }
 0x2b6   : > { %1356 = vmatprep.subr.bf16.mxu1 %v1547_v8 }
 0x2bc   : > { %1347 = vmatmul.mubr.msk.bf16.vlgmr.msra.gmra.mrb[8].mxu1 %vm405_vm2, %v755_v37 }
 0x2bd   : > { %1360 = vmatprep.mubr.msk.bf16.mxu1 %vm1548_vm1, %v1547_v8 }
 0x37b   : > { %v446_v38 = vpop.f32.mrb[4].mxu0 }
 0x37c   : > { %v1312_v39 = vpop.f32.mrb[5].mxu0  ;;  %v452_v40 = vsel %vm405_vm2, %v446_v38, -inf }
 0x37d   : > { %453 = vmax.xlane.f32.xlu1 %v452_v40  ;;  %v449_v41 = vpop.f32.mrb[6].mxu0 }
 0x37e   : > { %v1313_v42 = vpop.f32.mrb[7].mxu0 }
 0x37f   : > { %v560_v43 = vpop.f32.mrb[0].mxu1 }
 0x380   : > { %v1324_v44 = vpop.f32.mrb[1].mxu1  ;;  %v566_v45 = vsel %vm405_vm2, %v560_v43, -inf }
 0x381   : > { %567 = vmax.xlane.f32.xlu0 %v566_v45  ;;  %v563_v46 = vpop.f32.mrb[2].mxu1 }
 0x382   : > { %v1325_v47 = vpop.f32.mrb[3].mxu1 }
 0x387   : > { %v679_v48 = vpop.f32.mrb[4].mxu1 }
 0x388   : > { %v1336_v49 = vpop.f32.mrb[5].mxu1  ;;  %v685_v50 = vsel %vm405_vm2, %v679_v48, -inf }
 0x389   : > { %v682_v51 = vpop.f32.mrb[6].mxu1  ;;  %686 = vmax.xlane.f32.xlu1 %v685_v50  ;;  %v1449_v50 = vld [vmem:[%s1880_s3] sm:$0xff]  }
 0x38a   : > { %v1337_v52 = vpop.f32.mrb[7].mxu1  ;;  %1357 = vmatpush3.bf16.msra.mxu1 %v1449_v50 }
 0x38b   : > { %v1450_v52 = vld [vmem:[%s1880_s3 + $0x8] sm:$0xff]   ;;  %1358 = vmatprep.subr.bf16.mxu1 %v1547_v8 }
 0x38e   : > { %1359 = vmatpush3.bf16.msra.mxu1 %v1450_v52 }
 0x38f   : > { %v798_v53 = vpop.f32.mrb[8].mxu1  ;;  %1372 = vmatprep.subr.bf16.mxu1 %v1547_v8 }
 0x390   : > { %v1348_v54 = vpop.f32.mrb[9].mxu1  ;;  %v804_v55 = vsel %vm405_vm2, %v798_v53, -inf }
 0x391   : > { %805 = vmax.xlane.f32.xlu0 %v804_v55  ;;  %v801_v56 = vpop.f32.mrb[10].mxu1 }
 0x392   : > { %v1349_v57 = vpop.f32.mrb[11].mxu1 }
 0x40a   : > { %v454_v58 = vpop.xlane.xlu1 %453 }
 0x40b   : > { %v455_v59 = vsub.f32 %v446_v38, %v454_v58 }
 0x40d   : > { %v456_v60 = vmul.f32 1.442695, %v455_v59 }
 0x40e   : > { %v568_v61 = vpop.xlane.xlu0 %567 }
 0x40f   : > { %1463 = vpow2.f32 %v456_v60  ;;  %v569_v62 = vsub.f32 %v560_v43, %v568_v61 }
 0x411   : > { %v570_v63 = vmul.f32 1.442695, %v569_v62 }
 0x413   : > { %1465 = vpow2.f32 %v570_v63 }
 0x416   : > { %v687_v11 = vpop.xlane.xlu1 %686 }
 0x417   : > { %v688_v12 = vsub.f32 %v679_v48, %v687_v11 }
 0x419   : > { %v1464_v1 = vpop.eup %1463  ;;  %v689_v13 = vmul.f32 1.442695, %v688_v12 }
 0x41a   : > { %v458_v2 = vsel %vm405_vm2, %v1464_v1, 0.0 }
 0x41b   : > { %459 = vadd.xlane.f32.xlu1 %v458_v2 }
 0x41d   : > { %v1466_v3 = vpop.eup %1465 }
 0x41e   : > { %v806_v4 = vpop.xlane.xlu0 %805  ;;  %v572_v5 = vsel %vm405_vm2, %v1466_v3, 0.0 }
 0x41f   : > { %v807_v6 = vsub.f32 %v798_v53, %v806_v4  ;;  %573 = vadd.xlane.f32.xlu0 %v572_v5 }
 0x421   : > { %v808_v7 = vmul.f32 1.442695, %v807_v6 }
 0x423   : > { %1467 = vpow2.f32 %v808_v7 }
 0x424   : > { %1469 = vpow2.f32 %v689_v13 }
 0x42c   : > { %464 = vrot.lane.b32.xlu1 %v1694_v25, %s1556_s26  ;;  %s294_s26 = sand.u32 1, %s1537_s28  }
 0x42d   : > { %v1468_v9 = vpop.eup %1467 }
 0x42e   : > { %v810_v10 = vsel %vm405_vm2, %v1468_v9, 0.0  ;;  %v1470_v14 = vpop.eup %1469 }
 0x42f   : > { %811 = vadd.xlane.f32.xlu0 %v810_v10  ;;  %v691_v15 = vsel %vm405_vm2, %v1470_v14, 0.0 }
 0x445   : > { %578 = vrot.lane.b32.xlu0 %v1694_v25, %s1557_s10  ;;  %s1221_s10 = sshll.u32 %s294_s26, 3 }
 0x446   : > { %s296_s18 = scalar_lea.vmem [#allocation3], %s1221_s10  ;;  %s1489_s10 = scalar_lea.vmem %s1488_s25, 256 }
 0x447   : > { %s1158_s19 = sshll.u32 %s296_s18, 4  ;;  %s1836_s19 = int_to_ptr.vmem [resolvable:$true] %s1158_s19 }
 0x448   : > { %p1490_p0 = scmp.lt.s32.totalorder %s1836_s19, %s1488_s25 }
 0x450   : > { %692 = vadd.xlane.f32.xlu1 %v691_v15 }
 0x461   : > { %697 = vrot.lane.b32.xlu1 %v1694_v25, %s1558_s12 }
 0x465   : > { %816 = vrot.lane.b32.xlu1 %v1694_v25, %s1559_s13 }
 0x4a8   : > { %v460_v16 = vpop.xlane.xlu1 %459 }
 0x4a9   : > { %1471 = vrcp.f32 %v460_v16 }
 0x4ac   : > { %v465_v17 = vpop.permute.xlu1 %464  ;;  %v574_v19 = vpop.xlane.xlu0 %573 }
 0x4ad   : > { %v471_v18 = vsel %vm469_vm3, %v465_v17, 0  ;;  %1473 = vrcp.f32 %v574_v19  ;;  %v1451_v17 = vld [vmem:[%s1881_s4] sm:$0xff]   ;;  %v1454_v19 = vld [vmem:[%s1883_s6 + $0x8] sm:$0xff]  }
 0x4ae   : > { %1315 = vmatpush3.bf16.msra.mxu0 %v471_v18  ;;  %v1453_v18 = vld [vmem:[%s1883_s6] sm:$0xff]  }
 0x4af   : > { %1326 = vmatprep.subr.bf16.mxu0 %v1547_v8 }
 0x4b3   : > { %v1472_v20 = vpop.eup %1471 }
 0x4b4   : > { %v462_v21 = vmul.f32 %v1472_v20, %v1464_v1  ;;  %v1455_v20 = vld [vmem:[%s1883_s6 + $0x10] sm:$0xff]  }
 0x4b6   : > { %v463_v22 = vpack.c.bf16 %v462_v21, %v462_v21 }
 0x4b7   : > { %v1474_v23 = vpop.eup %1473 }
 0x4b8   : > { %1317 = vmatmul.mubr.msk.bf16.vlgmr.msra.gmra.mrb[8].mxu0 %vm405_vm2, %v463_v22  ;;  %v576_v25 = vmul.f32 %v1474_v23, %v1466_v3  ;;  %v1240_v3 = vld [vmem:[%s1884_s7 + $0x4] ss:$0 sm:$0xff] }
 0x4b9   : > { %1328 = vmatprep.mubr.msk.bf16.mxu0 %vm1548_vm1, %v1547_v8 }
 0x4ba   : > { %v577_v28 = vpack.c.bf16 %v576_v25, %v576_v25  ;;  %v1244_v25 = vld [vmem:[%s1884_s7 + $0x2] ss:$0 sm:$0xff] }
 0x4bc   : > { %v812_v24 = vpop.xlane.xlu0 %811 }
 0x4c0   : > { %v579_v26 = vpop.permute.xlu0 %578 }
 0x4c1   : > { %v584_v27 = vsel %vm469_vm3, %v579_v26, 0 }
 0x4c2   : > { %1327 = vmatpush3.bf16.msra.mxu0 %v584_v27  ;;  %v1245_v27 = vld [vmem:[%s1884_s7 + $0x3] ss:$0 sm:$0xff] }
 0x4c3   : > { %1338 = vmatprep.subr.bf16.mxu0 %v1547_v8 }
 0x4c5   : > { %1329 = vmatmul.mubr.msk.bf16.vlgmr.msra.gmra.mrb[12].mxu0 %vm405_vm2, %v577_v28 }
 0x4c6   : > { %1340 = vmatprep.mubr.msk.bf16.mxu0 %vm1548_vm1, %v1547_v8 }
 0x4dd   : > { %v693_v29 = vpop.xlane.xlu1 %692 }
 0x4de   : > { %1475 = vrcp.f32 %v693_v29 }
 0x4df   : > { %1477 = vrcp.f32 %v812_v24 }
 0x4e1   : > { %v698_v30 = vpop.permute.xlu1 %697 }
 0x4e2   : > { %v703_v31 = vsel %vm469_vm3, %v698_v30, 0 }
 0x4e3   : > { %1339 = vmatpush3.bf16.msra.mxu0 %v703_v31  ;;  %v1456_v31 = vld [vmem:[%s1883_s6 + $0x18] sm:$0xff]  }
 0x4e4   : > { %1350 = vmatprep.subr.bf16.mxu0 %v1547_v8 }
 0x4e5   : > { %v817_v34 = vpop.permute.xlu1 %816 }
 0x4e6   : > { %v822_v37 = vsel %vm469_vm3, %v817_v34, 0  ;;  %v1459_v34 = vld [vmem:[%s1883_s6 + $0x30] sm:$0xff]  }
 0x4e8   : > { %v1476_v32 = vpop.eup %1475 }
 0x4e9   : > { %v695_v33 = vmul.f32 %v1476_v32, %v1470_v14  ;;  %v1478_v36 = vpop.eup %1477  ;;  %v1457_v32 = vld [vmem:[%s1883_s6 + $0x20] sm:$0xff]  }
 0x4ea   : > { %v814_v38 = vmul.f32 %v1478_v36, %v1468_v9  ;;  %v1246_v36 = vld [vmem:[%s1882_s5] ss:$0 sm:$0xff] }
 0x4eb   : > { %v696_v35 = vpack.c.bf16 %v695_v33, %v695_v33  ;;  %v1458_v33 = vld [vmem:[%s1883_s6 + $0x28] sm:$0xff]  }
 0x4ec   : > { %v815_v39 = vpack.c.bf16 %v814_v38, %v814_v38 }
 0x4ed   : > { %1341 = vmatmul.mubr.msk.bf16.vlgmr.msra.gmra.mrb[16].mxu0 %vm405_vm2, %v696_v35  ;;  %v1460_v35 = vld [vmem:[%s1883_s6 + $0x38] sm:$0xff]  }
 0x4ee   : > { %1351 = vmatpush3.bf16.msra.mxu0 %v822_v37  ;;  %1352 = vmatprep.mubr.msk.bf16.mxu0 %vm1548_vm1, %v1547_v8 }
 0x4ef   : > { %1364 = vmatprep.subr.bf16.mxu0 %v1547_v8 }
 0x4f5   : > { %1353 = vmatmul.mubr.msk.bf16.vlgmr.msra.gmra.mrb[20].mxu0 %vm405_vm2, %v815_v39 }
 0x4f6   : > { %1368 = vmatprep.mubr.msk.bf16.mxu0 %vm1548_vm1, %v1547_v8  ;;  %1365 = vmatpush3.bf16.msra.mxu0 %v1451_v17 }
 0x4f7   : > { %1366 = vmatprep.subr.bf16.mxu0 %v1547_v8 }
 0x58b   : > { %v507_v40 = vpop.f32.mrb[8].mxu0 }
 0x58c   : > { %v513_v41 = vpack.c.bf16 %v507_v40, %v507_v40  ;;  %v1318_v42 = vpop.f32.mrb[9].mxu0 }
 0x58d   : > { %v510_v43 = vpop.f32.mrb[10].mxu0 }
 0x58e   : > { %515 = vst.msk [vmem:[#allocation2] sm:$0xf] %vm514_vm4, %v513_v41  ;;  %v1319_v44 = vpop.f32.mrb[11].mxu0 }
 0x598   : > { %v620_v45 = vpop.f32.mrb[12].mxu0 }
 0x599   : > { %v1263_v46 = vpack.c.bf16 %v620_v45, %v620_v45  ;;  %v1330_v47 = vpop.f32.mrb[13].mxu0 }
 0x59a   : > { %v623_v48 = vpop.f32.mrb[14].mxu0  ;;  %v1250_v47 = vld [vmem:[%s1884_s7 + $0x5] ss:$0 sm:$0xff] }
 0x59b   : > { %630 = vrot.lane.b32.xlu0 %v1263_v46, %s1560_s17  ;;  %v1331_v49 = vpop.f32.mrb[15].mxu0  ;;  %s1260_s17 = sshll.u32 %s1630_s9, 7  ;;  %s1145_s9 = scalar_lea.sflag [#allocation4], %s294_s26 }
 0x5c0   : > { %v739_v51 = vpop.f32.mrb[16].mxu0 }
 0x5c1   : > { %v1264_v53 = vpack.c.bf16 %v739_v51, %v739_v51  ;;  %v1342_v54 = vpop.f32.mrb[17].mxu0 }
 0x5c2   : > { %v742_v55 = vpop.f32.mrb[18].mxu0 }
 0x5c3   : > { %749 = vrot.lane.b32.xlu1 %v1264_v53, %s1561_s22  ;;  %v1343_v56 = vpop.f32.mrb[19].mxu0  ;;  %s1834_s22 = scalar_lea.hbm %s1885_s8, %s1260_s17 }
 0x5c8   : > { %v858_v57 = vpop.f32.mrb[20].mxu0 }
 0x5c9   : > { %v1265_v58 = vpack.c.bf16 %v858_v57, %v858_v57  ;;  %v1354_v59 = vpop.f32.mrb[21].mxu0 }
 0x5ca   : > { %v861_v60 = vpop.f32.mrb[22].mxu0 }
 0x5cb   : > { %868 = vrot.lane.b32.xlu0 %v1265_v58, %s1562_s23  ;;  %v1355_v61 = vpop.f32.mrb[23].mxu0  ;;  %s1483_s23 = scalar_lea.vmem %s1836_s19, 128 }
 0x5cc   : > { %p1484_p11 = scmp.ne.s32.totalorder %s1836_s19, %s1483_s23  ;;  %p1491_p1 = scmp.lt.s32.totalorder %s1489_s10, %s1483_s23 }
 0x5ce   : > { %p1485_p12 = pnand %p1484_p11, %p1647_p5  ;;  %p1492_p2 = por %p1491_p1, %p1490_p0 }
 0x5d0   : > { %p1486_p13 = pneg %p1485_p12 }
 0x5d2   : > { %p1493_p3 = pnand %p1492_p2, %p1486_p13 }
 0x60d   : > { %v631_v62 = vpop.permute.xlu0 %630 }
 0x60e   : > { %634 = vst.msk [vmem:[#allocation2] sm:$0xf] %vm633_vm5, %v631_v62 }
 0x635   : > { %v750_v63 = vpop.permute.xlu1 %749 }
 0x636   : > { %753 = vst.msk [vmem:[#allocation2] sm:$0xf] %vm752_vm6, %v750_v63 }
 0x63d   : > { %v869_v1 = vpop.permute.xlu0 %868 }
 0x63e   : > { %872 = vst.msk [vmem:[#allocation2] sm:$0xf] %vm871_vm7, %v869_v1 }
 0x645   : > { %v873_v2 = vld [vmem:[#allocation2] sm:$0xf] }
 0x646   : > { %1361 = vmatmul.mubr.msk.bf16.vlgmr.msra.gmra.mrb[12].mxu1 %vm309_vm0, %v873_v2 }
 0x647   : > { %1388 = vmatprep.mubr.msk.bf16.mxu1 %vm1548_vm1, %v1547_v8  ;;  %1373 = vmatpush3.bf16.msra.mxu1 %v1453_v18 }
 0x648   : > { %1374 = vmatprep.subr.bf16.mxu1 %v1547_v8 }
 0x64b   : > { %1375 = vmatpush3.bf16.msra.mxu1 %v1454_v19 }
 0x64c   : > { %1376 = vmatprep.subr.bf16.mxu1 %v1547_v8 }
 0x64f   : > { %1377 = vmatpush3.bf16.msra.mxu1 %v1455_v20 }
 0x650   : > { %1378 = vmatprep.subr.bf16.mxu1 %v1547_v8 }
 0x653   : > { %1379 = vmatpush3.bf16.msra.mxu1 %v1456_v31 }
 0x654   : > { %1380 = vmatprep.subr.bf16.mxu1 %v1547_v8 }
 0x657   : > { %1381 = vmatpush3.bf16.msra.mxu1 %v1457_v32 }
 0x658   : > { %1382 = vmatprep.subr.bf16.mxu1 %v1547_v8 }
 0x65b   : > { %1383 = vmatpush3.bf16.msra.mxu1 %v1458_v33 }
 0x65c   : > { %1384 = vmatprep.subr.bf16.mxu1 %v1547_v8 }
 0x65f   : > { %1385 = vmatpush3.bf16.msra.mxu1 %v1459_v34 }
 0x660   : > { %1386 = vmatprep.subr.bf16.mxu1 %v1547_v8 }
 0x663   : > { %1387 = vmatpush3.bf16.msra.mxu1 %v1460_v35 }
 0x719   : > { %v931_v4 = vpop.f32.mrb[12].mxu1 }
 0x71a   : > { %v932_v5 = vadd.f32 %v1240_v3, %v931_v4  ;;  %v1362_v6 = vpop.f32.mrb[13].mxu1 }
 0x71b   : > { %v934_v7 = vpop.f32.mrb[14].mxu1 }
 0x71c   : > { %v1771_v9 = vadd.f32 %v932_v5, %v1662_v0  ;;  %v1363_v10 = vpop.f32.mrb[15].mxu1  ;;  %v1452_v0 = vld [vmem:[%s1881_s4 + $0x8] sm:$0xff]  }
 0x71d   : > { %1367 = vmatpush3.bf16.msra.mxu0 %v1452_v0 }
 0x71e   : > { %v938_v11 = vsel %vm309_vm0, %v1771_v9, 0.0 }
 0x71f   : > { %939 = vadd.xlane.f32.xlu1 %v938_v11 }
 0x7ac   : > { %v940_v12 = vpop.xlane.xlu1 %939 }
 0x7ad   : > { %v941_v13 = vmul.f32 0.03125, %v940_v12 }
 0x7af   : > { %v942_v14 = vsub.f32 %v1771_v9, %v941_v13 }
 0x7b1   : > { %v943_v15 = vmul.f32 %v942_v14, %v942_v14 }
 0x7b3   : > { %v944_v16 = vsel %vm309_vm0, %v943_v15, 0.0 }
 0x7b4   : > { %945 = vadd.xlane.f32.xlu0 %v944_v16 }
 0x841   : > { %v946_v21 = vpop.xlane.xlu0 %945 }
 0x842   : > { %v947_v22 = vmul.f32 0.03125, %v946_v21 }
 0x844   : > { %v948_v23 = vadd.f32 1e-05, %v947_v22 }
 0x846   : > { %1479 = vrsqrt.f32 %v948_v23 }
 0x850   : > { %v1480_v24 = vpop.eup %1479 }
 0x851   : > { %v950_v26 = vmul.f32 %v1480_v24, %v942_v14 }
 0x853   : > { %v955_v28 = vmul.f32 %v1244_v25, %v950_v26 }
 0x855   : > { %v960_v29 = vadd.f32 %v1245_v27, %v955_v28 }
 0x857   : > { %v961_v30 = vpack.c.bf16 %v960_v29, %v960_v29 }
 0x859   : > { %1369 = vmatmul.mubr.msk.bf16.vlgmr.msra.gmra.mrb[24].mxu0 %vm309_vm0, %v961_v30 }
 0x92c   : > { %v1022_v37 = vpop.f32.mrb[24].mxu0 }
 0x92d   : > { %v1023_v38 = vadd.f32 %v1246_v36, %v1022_v37  ;;  %v1370_v39 = vpop.f32.mrb[25].mxu0 }
 0x92e   : > { %v1025_v40 = vpop.f32.mrb[26].mxu0 }
 0x92f   : > { %v1029_v41 = vmul.f32 0.70710677, %v1023_v38  ;;  %v1371_v42 = vpop.f32.mrb[27].mxu0  ;;  %v1028_v8 = vmul.f32 0.5, %v1023_v38 }
 0x931   : > { %1481 = verf.f32 %v1029_v41 }
 0x93b   : > { %v1482_v43 = vpop.eup %1481 }
 0x93c   : > { %v1031_v44 = vadd.f32 1.0, %v1482_v43 }
 0x93e   : > { %v1032_v45 = vmul.f32 %v1031_v44, %v1028_v8 }
 0x940   : > { %v1033_v46 = vpack.c.bf16 %v1032_v45, %v1032_v45 }
 0x942   : > { %1389 = vmatmul.mubr.bf16.vlgmr.msra.gmra.mrb[16].mxu1 %v1033_v46 }
 0xa15   : > { %v1136_v48 = vpop.f32.mrb[16].mxu1 }
 0xa16   : > { %v1137_v49 = vadd.f32 %v1250_v47, %v1136_v48  ;;  %v1390_v50 = vpop.f32.mrb[17].mxu1 }
 0xa17   : > { %v1139_v51 = vpop.f32.mrb[18].mxu1 }
 0xa18   : > { %v1142_v52 = vadd.f32 %v1137_v49, %v1771_v9  ;;  %v1391_v53 = vpop.f32.mrb[19].mxu1 }
 0xa1a   : > { %1143 = vst.msk [vmem:[%s296_s18] sm:$0xff] %vm309_vm0, %v1142_v52 }
 0xa1b   : > { %1496 = shalt.err (!%p1493_p3)
}
 0xa1c   : > { %s1497_s26 = scalar_lea.hbm %s1834_s22, 128  ;;  %s1501_s17 = scalar_lea.hbm %s1885_s8, 256 }
 0xa1d   : > { %p1498_p4 = scmp.ne.s32.totalorder %s1834_s22, %s1497_s26  ;;  %p1502_p9 = scmp.lt.u32.totalorder %s1834_s22, %s1885_s8 }
 0xa1e   : > { %p1503_p10 = scmp.lt.u32.totalorder %s1501_s17, %s1497_s26  ;;  %p1505_p12 = scmp.lt.u32.totalorder %s1497_s26, %s1834_s22 }
 0xa1f   : > { %p1499_p7 = pnand %p1498_p4, %p1647_p5 }
 0xa20   : > { %p1504_p11 = por %p1503_p10, %p1502_p9 }
 0xa21   : > { %p1500_p8 = pneg %p1499_p7 }
 0xa22   : > { %p1506_p13 = por %p1505_p12, %p1504_p11 }
 0xa24   : > { %p1507_p0 = pnand %p1506_p13, %p1500_p8 }
 0xa26   : > { %1510 = shalt.err (!%p1507_p0)
}
 0xa27   : > { %1392 = dma.vmem_to_hbm [thread:$0]  (%p1647_p5), %s1836_s19, 128, %s1834_s22, %s1145_s9  }
 0xa28 PF: > { %p1398_p1 = scmp.ge.s32.totalorder %s1545_s30, 2  ;;  %s1170_s21 = sand.u32 1, %s1533_s27  }
 0xa29   : > { %s1171_s23 = scalar_lea.sflag [#allocation4], %s1170_s21 }
 0xa2a   : > { %p1395_p2 = pnand %p1398_p1, %p1651_p6 }
 0xa2c   : > { %1528 = dma.done.wait (!%p1395_p2), %s1171_s23, 128  }
 0xa2d   : > { %1530 = vsyncadd (!%p1395_p2), %s1171_s23, 4294967168  ;;  %p18_p3 = scmp.ge.s32.totalorder %s1634_s11, 4   ;;  %s1888_s27 = smov %s1537_s28 }
 0xa2e   : > { %s1889_s28 = smov %s1541_s29  ;;  %s1890_s29 = smov %s1645_s14 }
 0xa2f   : > { %s1891_s30 = smov %s1634_s11  ;;  %20 = sbr.rel (!%p18_p3) target bundleno = 3 (0x3), region = 87 }
 0xa36   :  { %1176 = vsyncpa [#allocation4], 1 }
 0xa37   :  { %1178 = vsyncpa [#allocation4 + $0x1], 1 }

</bundles_post_ra>
